<compile_context>
chip_gen: v6e
topology: v6e:2x2x1
jax: 0.10.0
libtpu: 0.0.40
codegen_flags: <defaults>
</compile_context>

<pallas_src>
import numpy as np
import jax
import jax.numpy as jnp
from jax.experimental import pallas as pl
from jax.experimental.pallas import tpu as pltpu


# ----------------------------- one-time parameter prep -----------------------------
def pcsa_prepare(params, x_shape, groups):
    """Expand PCSA parameters + problem structure into the small constant operands the
    kernel consumes.  Depends only on parameters and static shapes -> call once."""
    w1, b1, w31, b31, w32, b32, gnw, gnb = params
    b, c, h, w = x_shape
    g = groups
    cg = c // g
    hw = h * w
    f32 = np.float32

    w1_np = np.asarray(w1, f32)[:, :, 0, 0]
    w31_np = np.asarray(w31, f32)
    w32_np = np.asarray(w32, f32)
    eye_g = np.eye(g, dtype=f32)

    # per-group 1x1 conv weight, expanded over groups only: (C, C) -- NO batch kron
    w1c = np.kron(eye_g, w1_np)

    # conv3x3_1 (grouped/shared) + conv3x3_2 (full) folded into ONE im2col weight (2C, 9C)
    wconv = np.zeros((2 * c, 9 * c), f32)
    for dy in range(3):
        for dx in range(3):
            t = dy * 3 + dx
            wconv[:c, t * c:(t + 1) * c] = np.kron(eye_g, w31_np[:, :, dy, dx])
            wconv[c:, t * c:(t + 1) * c] = w32_np[:, :, dy, dx]

    # all small per-channel parameters packed into ONE (2C, 4) array (one DMA)
    chanp = np.zeros((2 * c, 4), f32)
    chanp[:c, 0] = np.tile(np.asarray(b31, f32), g)   # conv3x3_1 bias
    chanp[c:, 0] = np.asarray(b32, f32)               # conv3x3_2 bias
    chanp[:c, 1] = np.tile(np.asarray(b1, f32), g)    # conv1x1 bias
    chanp[:c, 2] = np.tile(np.asarray(gnw, f32), g)   # GroupNorm gamma
    chanp[:c, 3] = np.tile(np.asarray(gnb, f32), g)   # GroupNorm beta

    # pool_h / pool_w as one averaging matrix: x2d @ pool = [mean over W | mean over H]
    pool = np.zeros((hw, h + w), f32)
    for hh in range(h):
        pool[hh * w:(hh + 1) * w, hh] = 1.0 / w
    for ww in range(w):
        pool[ww::w, h + ww] = 1.0 / h

    # combined coordinate-gate expansion: [gate_h | gate_w] @ ehw -> [h-map | w-map]
    ehw = np.zeros((h + w, 2 * hw), f32)
    for hh in range(h):
        ehw[hh, hh * w:(hh + 1) * w] = 1.0
    for ww in range(w):
        ehw[h + ww, hw + ww::w] = 1.0

    # per-group channel sum / broadcast-back (G, C), (C, G) -- NO batch kron
    smat = np.kron(eye_g, np.ones((1, cg), f32))
    smat_t = np.ascontiguousarray(smat.T)

    # 3x3 tap validity masks (zero padding) for the in-kernel im2col rolls: (9, HW)
    hh_idx = np.repeat(np.arange(h), w)
    ww_idx = np.tile(np.arange(w), h)
    mask9 = np.zeros((9, hw), f32)
    for dy in range(3):
        for dx in range(3):
            valid = np.ones(hw, bool)
            if dy == 0:
                valid &= hh_idx >= 1
            if dy == 2:
                valid &= hh_idx <= h - 2
            if dx == 0:
                valid &= ww_idx >= 1
            if dx == 2:
                valid &= ww_idx <= w - 2
            mask9[dy * 3 + dx] = valid.astype(f32)

    return tuple(jnp.asarray(a) for a in
                 (w1c, wconv, chanp, pool, ehw, smat, smat_t, mask9))


# ----------------------------------- Pallas kernel -----------------------------------
def _make_kernel(b, c, h, w):
    hw = h * w
    inv_hw = 1.0 / hw
    inv_bhw = 1.0 / (b * hw)
    f32 = jnp.float32

    def kernel(x_ref, w1c_ref, wconv_ref, chanp_ref, pool_ref, ehw_ref,
               smat_ref, smatt_ref, mask_ref, o_ref):
        x = x_ref[...]                                    # (BC, HW) lane-dense view
        cp = chanp_ref[...]
        bconv = cp[:, 0:1]                                # (2C, 1) conv biases
        b1c = cp[:c, 1:2]                                 # (C, 1)  1x1 bias
        gnwc = cp[:c, 2:3]                                # (C, 1)  GN gamma
        gnbc = cp[:c, 3:4]                                # (C, 1)  GN beta
        w1c = w1c_ref[...]                                # (C, C)
        wconv = wconv_ref[...]                            # (2C, 9C)
        smat = smat_ref[...]                              # (G, C)
        smatt = smatt_ref[...]                            # (C, G)
        mk = mask_ref[...]                                # (9, HW)

        # --- coordinate attention: pool (one matmul) + per-batch group 1x1 + gates ---
        pooled = jnp.dot(x, pool_ref[...], preferred_element_type=f32)      # (BC, H+W)
        gates = jnp.concatenate(
            [jax.nn.sigmoid(jnp.dot(w1c, pooled[i * c:(i + 1) * c, :],
                                    preferred_element_type=f32) + b1c)
             for i in range(b)], axis=0)                                     # (BC, H+W)
        gexp = jnp.dot(gates, ehw_ref[...], preferred_element_type=f32)      # (BC, 2*HW)
        x0 = x * gexp[:, :hw] * gexp[:, hw:]                                 # (BC, HW)

        # --- single-pass statistics (GroupNorm per row; BatchNorm via batch-block adds) ---
        rs = jnp.sum(x0, axis=1, keepdims=True)                              # (BC, 1)
        rss = jnp.sum(x0 * x0, axis=1, keepdims=True)
        mu = rs * inv_hw
        var = jnp.maximum(rss * inv_hw - mu * mu, 0.0)                       # clamped
        gscale = jax.lax.rsqrt(var + 1e-5)                                   # (BC, 1)
        brs, brss = rs[0:c], rss[0:c]
        for i in range(1, b):
            brs = brs + rs[i * c:(i + 1) * c]
            brss = brss + rss[i * c:(i + 1) * c]
        bmu = brs * inv_bhw
        bvar = jnp.maximum(brss * inv_bhw - bmu * bmu, 0.0)
        bscale = jax.lax.rsqrt(bvar + 1e-5)                                  # (C, 1)

        # --- in-kernel im2col: 9 taps via lane rolls + edge masks (no HBM duplication) ---
        taps = []
        for dy in range(3):
            for dx in range(3):
                ti = dy * 3 + dx
                d = (dy - 1) * w + (dx - 1)                # tap[p] = x[p + d] (masked)
                src = x if d == 0 else pltpu.roll(x, shift=(-d) % hw, axis=1)
                taps.append(src if (dy == 1 and dx == 1) else src * mk[ti:ti + 1, :])

        # --- per-batch main loop: packed K=9C conv matmul + both attention branches ---
        for i in range(b):
            sl = slice(i * c, (i + 1) * c)
            xb = x[sl]                                                       # (C, HW)
            x0b = x0[sl]
            x1b = (x0b - mu[sl]) * gscale[sl] * gnwc + gnbc                  # GroupNorm
            x3b = (x0b - bmu) * bscale                                       # BatchNorm (train stats)

            opb = jnp.concatenate([tp[sl] for tp in taps], axis=0)           # (9C, HW)
            conv = jnp.dot(wconv, opb, preferred_element_type=f32) + bconv   # (2C, HW)
            x2b = conv[:c]                                                   # grouped conv3x3_1
            x4b = conv[c:]                                                   # full conv3x3_2

            # branch 1: per-group channel softmax of pooled means -> group spatial gate.
            # group sums of [em1*x2 | em2*x1 | em1 | em2] ride one (G,C)@(C,2HW+2) matmul.
            m1 = jnp.sum(x1b, axis=1, keepdims=True) * inv_hw                # (C, 1)
            m2 = jnp.sum(x2b, axis=1, keepdims=True) * inv_hw
            em1 = jnp.exp(m1 - jnp.max(m1, axis=0, keepdims=True))           # shift is per-group const
            em2 = jnp.exp(m2 - jnp.max(m2, axis=0, keepdims=True))
            cat = jnp.concatenate([em1 * x2b, em2 * x1b, em1, em2], axis=1)  # (C, 2HW+2)
            gs = jnp.dot(smat, cat, preferred_element_type=f32)              # (G, 2HW+2)
            w1map = (gs[:, :hw] * pl.reciprocal(gs[:, 2 * hw:2 * hw + 1], approx=True)
                     + gs[:, hw:2 * hw] * pl.reciprocal(gs[:, 2 * hw + 1:2 * hw + 2],
                                                        approx=True))        # (G, HW)
            sig1 = jnp.dot(smatt, jax.nn.sigmoid(w1map),
                           preferred_element_type=f32)                       # (C, HW)

            # branch 2: spatial softmax of channel means (sublane reduce), combine, gate
            cm3 = jnp.mean(x3b, axis=0, keepdims=True)                       # (1, HW)
            cm4 = jnp.mean(x4b, axis=0, keepdims=True)
            e3 = jnp.exp(cm3 - jnp.max(cm3, axis=1, keepdims=True))
            e4 = jnp.exp(cm4 - jnp.max(cm4, axis=1, keepdims=True))
            sm3 = e3 * pl.reciprocal(jnp.sum(e3, axis=1, keepdims=True), approx=True)
            sm4 = e4 * pl.reciprocal(jnp.sum(e4, axis=1, keepdims=True), approx=True)
            w2 = jnp.sum(sm3 * x4b + sm4 * x3b, axis=1, keepdims=True)       # (C, 1)

            # lane-dense, sublane-aligned per-batch store
            o_ref[pl.ds(i * c, c), :] = (xb * (sig1 + jax.nn.sigmoid(w2))).astype(o_ref.dtype)

    return kernel


def pcsa_pallas(x_nchw, prepped):
    w1c, wconv, chanp, pool_m, ehw_m, smat, smat_t, mask9 = prepped
    b, c, h, w = x_nchw.shape
    bc, hw = b * c, h * w
    x2d = x_nchw.astype(jnp.float32).reshape(bc, hw)     # lane-dense view, no transpose
    kernel = _make_kernel(b, c, h, w)
    vmem = pl.BlockSpec(memory_space=pltpu.MemorySpace.VMEM)
    out2d = pl.pallas_call(
        kernel,
        out_shape=jax.ShapeDtypeStruct((bc, hw), jnp.float32),
        in_specs=[vmem] * 9,
        out_specs=vmem,
    )(x2d, w1c, wconv, chanp, pool_m, ehw_m, smat, smat_t, mask9)
    return out2d.reshape(b, c, h, w)


# ------------------------- pure-JAX reference (mirrors PyTorch) -------------------------
def pcsa_reference(x, params, groups):
    w1, b1, w31, b31, w32, b32, gnw, gnb = params
    b, c, h, w = x.shape
    cg = c // groups
    hp = jax.lax.Precision.HIGHEST

    def conv(inp, wt, bias, pad):
        out = jax.lax.conv_general_dilated(
            inp, wt, window_strides=(1, 1), padding=[(pad, pad), (pad, pad)],
            dimension_numbers=("NCHW", "OIHW", "NCHW"), precision=hp)
        return out + bias.reshape(1, -1, 1, 1)

    gx = x.reshape(b * groups, cg, h, w)
    x_h = jnp.mean(gx, axis=3, keepdims=True)
    x_w = jnp.transpose(jnp.mean(gx, axis=2, keepdims=True), (0, 1, 3, 2))
    hw_ = conv(jnp.concatenate([x_h, x_w], axis=2), w1, b1, 0)
    xh2, xw2 = hw_[:, :, :h, :], hw_[:, :, h:, :]
    x0 = gx * jax.nn.sigmoid(xh2) * jax.nn.sigmoid(jnp.transpose(xw2, (0, 1, 3, 2)))

    mu = jnp.mean(x0, axis=(2, 3), keepdims=True)
    var = jnp.var(x0, axis=(2, 3), keepdims=True)
    x1 = (x0 - mu) / jnp.sqrt(var + 1e-5) * gnw.reshape(1, cg, 1, 1) + gnb.reshape(1, cg, 1, 1)
    x2 = conv(gx, w31, b31, 1)

    x11 = jax.nn.softmax(jnp.mean(x1, axis=(2, 3)), axis=-1)[:, None, :]
    x12 = x1.reshape(b * groups, cg, h * w)
    x21 = jax.nn.softmax(jnp.mean(x2, axis=(2, 3)), axis=-1)[:, None, :]
    x22 = x2.reshape(b * groups, cg, h * w)
    weights1 = (jnp.matmul(x11, x22, precision=hp)
                + jnp.matmul(x21, x12, precision=hp)).reshape(b * groups, 1, h, w)

    x0f = x0.reshape(b, c, h, w)
    bm = jnp.mean(x0f, axis=(0, 2, 3), keepdims=True)
    bv = jnp.var(x0f, axis=(0, 2, 3), keepdims=True)
    x3 = (x0f - bm) / jnp.sqrt(bv + 1e-5)
    x4 = conv(x, w32, b32, 1)

    x31 = jax.nn.softmax(jnp.mean(x3, axis=1).reshape(b, 1, h * w), axis=-1)
    x32_ = jnp.transpose(x3.reshape(b, c, h * w), (0, 2, 1))
    x41 = jax.nn.softmax(jnp.mean(x4, axis=1).reshape(b, 1, h * w), axis=-1)
    x42_ = jnp.transpose(x4.reshape(b, c, h * w), (0, 2, 1))
    weights2 = (jnp.matmul(x31, x42_, precision=hp)
                + jnp.matmul(x41, x32_, precision=hp)).reshape(b, c, 1, 1)

    return (gx * jax.nn.sigmoid(weights1)).reshape(b, c, h, w) + x * jax.nn.sigmoid(weights2)


if __name__ == "__main__":
    # channels must be >= factor (PyTorch asserts channels // groups > 0); C=16, factor=8.
    B, C, H, W, FACTOR = 2, 16, 16, 16, 8
    CG = C // FACTOR

    key = jax.random.PRNGKey(0)
    kw1, kb1, kw31, kb31, kw32, kb32, kgw, kgb, kx = jax.random.split(key, 9)
    params = (
        0.3 * jax.random.normal(kw1, (CG, CG, 1, 1), jnp.float32),   # conv1x1 weight
        0.1 * jax.random.normal(kb1, (CG,), jnp.float32),            # conv1x1 bias
        0.2 * jax.random.normal(kw31, (CG, CG, 3, 3), jnp.float32),  # conv3x3_1 weight
        0.1 * jax.random.normal(kb31, (CG,), jnp.float32),           # conv3x3_1 bias
        0.1 * jax.random.normal(kw32, (C, C, 3, 3), jnp.float32),    # conv3x3_2 weight
        0.1 * jax.random.normal(kb32, (C,), jnp.float32),            # conv3x3_2 bias
        1.0 + 0.1 * jax.random.normal(kgw, (CG,), jnp.float32),      # GroupNorm gamma
        0.1 * jax.random.normal(kgb, (CG,), jnp.float32),            # GroupNorm beta
    )
    x = jax.random.normal(kx, (B, C, H, W), jnp.float32)

    prepped = pcsa_prepare(params, (B, C, H, W), FACTOR)   # hoisted: runs once, reused
    fwd = jax.jit(pcsa_pallas)

    out = jax.block_until_ready(fwd(x, prepped))
    ref = jax.block_until_ready(pcsa_reference(x, params, FACTOR))
    err = float(jnp.max(jnp.abs(out - ref)))
    assert out.shape == (B, C, H, W)
    assert err < 5e-3, f"max abs error vs reference: {err}"
    print("KERNEL_OK")
</pallas_src>

<mosaic_0001>
module attributes {stable_mosaic.version = 11 : i64} {
  func.func @kernel(%arg0: memref<32x256xf32, #tpu.memory_space<vmem>>, %arg1: memref<16x16xf32, #tpu.memory_space<vmem>>, %arg2: memref<32x144xf32, #tpu.memory_space<vmem>>, %arg3: memref<32x4xf32, #tpu.memory_space<vmem>>, %arg4: memref<256x32xf32, #tpu.memory_space<vmem>>, %arg5: memref<32x512xf32, #tpu.memory_space<vmem>>, %arg6: memref<8x16xf32, #tpu.memory_space<vmem>>, %arg7: memref<16x8xf32, #tpu.memory_space<vmem>>, %arg8: memref<9x256xf32, #tpu.memory_space<vmem>>, %arg9: memref<32x256xf32, #tpu.memory_space<vmem>>) attributes {dimension_semantics = [], scalar_prefetch = 0 : i64, scratch_operands = 0 : i64, tpu.core_type = #tpu.core_type<tc>} {
    %c0 = arith.constant 0 : index
    %c0_0 = arith.constant 0 : index
    %0 = vector.load %arg0[%c0, %c0_0] : memref<32x256xf32, #tpu.memory_space<vmem>>, vector<32x256xf32>
    %c0_1 = arith.constant 0 : index
    %c0_2 = arith.constant 0 : index
    %1 = vector.load %arg3[%c0_1, %c0_2] : memref<32x4xf32, #tpu.memory_space<vmem>>, vector<32x4xf32>
    %2 = vector.extract_strided_slice %1 {offsets = [0, 0], sizes = [32, 1], strides = [1, 1]} : vector<32x4xf32> to vector<32x1xf32>
    %3 = vector.extract_strided_slice %1 {offsets = [0, 1], sizes = [16, 1], strides = [1, 1]} : vector<32x4xf32> to vector<16x1xf32>
    %4 = vector.extract_strided_slice %1 {offsets = [0, 2], sizes = [16, 1], strides = [1, 1]} : vector<32x4xf32> to vector<16x1xf32>
    %5 = vector.extract_strided_slice %1 {offsets = [0, 3], sizes = [16, 1], strides = [1, 1]} : vector<32x4xf32> to vector<16x1xf32>
    %c0_3 = arith.constant 0 : index
    %c0_4 = arith.constant 0 : index
    %6 = vector.load %arg1[%c0_3, %c0_4] : memref<16x16xf32, #tpu.memory_space<vmem>>, vector<16x16xf32>
    %c0_5 = arith.constant 0 : index
    %c0_6 = arith.constant 0 : index
    %7 = vector.load %arg2[%c0_5, %c0_6] : memref<32x144xf32, #tpu.memory_space<vmem>>, vector<32x144xf32>
    %c0_7 = arith.constant 0 : index
    %c0_8 = arith.constant 0 : index
    %8 = vector.load %arg6[%c0_7, %c0_8] : memref<8x16xf32, #tpu.memory_space<vmem>>, vector<8x16xf32>
    %c0_9 = arith.constant 0 : index
    %c0_10 = arith.constant 0 : index
    %9 = vector.load %arg7[%c0_9, %c0_10] : memref<16x8xf32, #tpu.memory_space<vmem>>, vector<16x8xf32>
    %c0_11 = arith.constant 0 : index
    %c0_12 = arith.constant 0 : index
    %10 = vector.load %arg8[%c0_11, %c0_12] : memref<9x256xf32, #tpu.memory_space<vmem>>, vector<9x256xf32>
    %c0_13 = arith.constant 0 : index
    %c0_14 = arith.constant 0 : index
    %11 = vector.load %arg4[%c0_13, %c0_14] : memref<256x32xf32, #tpu.memory_space<vmem>>, vector<256x32xf32>
    %cst = arith.constant dense<0.000000e+00> : vector<32x32xf32>
    %12 = tpu.matmul %0, %11, %cst {dimension_numbers = #tpu.dot_dimension_numbers<[1], [0], [0], [1], [0, 0, 1, 1], [], []>} : vector<32x256xf32>, vector<256x32xf32>, vector<32x32xf32> -> vector<32x32xf32>
    %13 = vector.extract_strided_slice %12 {offsets = [0, 0], sizes = [16, 32], strides = [1, 1]} : vector<32x32xf32> to vector<16x32xf32>
    %cst_15 = arith.constant dense<0.000000e+00> : vector<16x32xf32>
    %14 = tpu.matmul %6, %13, %cst_15 {dimension_numbers = #tpu.dot_dimension_numbers<[1], [0], [0], [1], [0, 0, 1, 1], [], []>} : vector<16x16xf32>, vector<16x32xf32>, vector<16x32xf32> -> vector<16x32xf32>
    %15 = vector.broadcast %3 : vector<16x1xf32> to vector<16x32xf32>
    %16 = arith.addf %14, %15 : vector<16x32xf32>
    %17 = arith.negf %16 : vector<16x32xf32>
    %18 = math.exp %17 : vector<16x32xf32>
    %cst_16 = arith.constant 1.000000e+00 : f32
    %19 = vector.broadcast %cst_16 : f32 to vector<16x32xf32>
    %20 = arith.addf %19, %18 : vector<16x32xf32>
    %21 = arith.divf %19, %20 : vector<16x32xf32>
    %22 = vector.extract_strided_slice %12 {offsets = [16, 0], sizes = [16, 32], strides = [1, 1]} : vector<32x32xf32> to vector<16x32xf32>
    %cst_17 = arith.constant dense<0.000000e+00> : vector<16x32xf32>
    %23 = tpu.matmul %6, %22, %cst_17 {dimension_numbers = #tpu.dot_dimension_numbers<[1], [0], [0], [1], [0, 0, 1, 1], [], []>} : vector<16x16xf32>, vector<16x32xf32>, vector<16x32xf32> -> vector<16x32xf32>
    %24 = vector.broadcast %3 : vector<16x1xf32> to vector<16x32xf32>
    %25 = arith.addf %23, %24 : vector<16x32xf32>
    %26 = arith.negf %25 : vector<16x32xf32>
    %27 = math.exp %26 : vector<16x32xf32>
    %cst_18 = arith.constant 1.000000e+00 : f32
    %28 = vector.broadcast %cst_18 : f32 to vector<16x32xf32>
    %29 = arith.addf %28, %27 : vector<16x32xf32>
    %30 = arith.divf %28, %29 : vector<16x32xf32>
    %31 = tpu.concatenate %21, %30 in 0 : vector<16x32xf32>, vector<16x32xf32> -> vector<32x32xf32>
    %c0_19 = arith.constant 0 : index
    %c0_20 = arith.constant 0 : index
    %32 = vector.load %arg5[%c0_19, %c0_20] : memref<32x512xf32, #tpu.memory_space<vmem>>, vector<32x512xf32>
    %cst_21 = arith.constant dense<0.000000e+00> : vector<32x512xf32>
    %33 = tpu.matmul %31, %32, %cst_21 {dimension_numbers = #tpu.dot_dimension_numbers<[1], [0], [0], [1], [0, 0, 1, 1], [], []>} : vector<32x32xf32>, vector<32x512xf32>, vector<32x512xf32> -> vector<32x512xf32>
    %34 = vector.extract_strided_slice %33 {offsets = [0, 0], sizes = [32, 256], strides = [1, 1]} : vector<32x512xf32> to vector<32x256xf32>
    %35 = arith.mulf %0, %34 : vector<32x256xf32>
    %36 = vector.extract_strided_slice %33 {offsets = [0, 256], sizes = [32, 256], strides = [1, 1]} : vector<32x512xf32> to vector<32x256xf32>
    %37 = arith.mulf %35, %36 : vector<32x256xf32>
    %cst_22 = arith.constant dense<0.000000e+00> : vector<32xf32>
    %38 = vector.multi_reduction <add>, %37, %cst_22 [1] : vector<32x256xf32> to vector<32xf32>
    %39 = vector.shape_cast %38 : vector<32xf32> to vector<32x1xf32>
    %40 = arith.mulf %37, %37 : vector<32x256xf32>
    %cst_23 = arith.constant dense<0.000000e+00> : vector<32xf32>
    %41 = vector.multi_reduction <add>, %40, %cst_23 [1] : vector<32x256xf32> to vector<32xf32>
    %42 = vector.shape_cast %41 : vector<32xf32> to vector<32x1xf32>
    %cst_24 = arith.constant 3.906250e-03 : f32
    %43 = vector.broadcast %cst_24 : f32 to vector<32x1xf32>
    %44 = arith.mulf %39, %43 : vector<32x1xf32>
    %cst_25 = arith.constant 3.906250e-03 : f32
    %45 = vector.broadcast %cst_25 : f32 to vector<32x1xf32>
    %46 = arith.mulf %42, %45 : vector<32x1xf32>
    %47 = arith.mulf %44, %44 : vector<32x1xf32>
    %48 = arith.subf %46, %47 : vector<32x1xf32>
    %cst_26 = arith.constant 0.000000e+00 : f32
    %49 = vector.broadcast %cst_26 : f32 to vector<32x1xf32>
    %50 = arith.maximumf %48, %49 : vector<32x1xf32>
    %cst_27 = arith.constant 9.99999974E-6 : f32
    %51 = vector.broadcast %cst_27 : f32 to vector<32x1xf32>
    %52 = arith.addf %50, %51 : vector<32x1xf32>
    %53 = math.rsqrt %52 : vector<32x1xf32>
    %54 = vector.extract_strided_slice %39 {offsets = [0, 0], sizes = [16, 1], strides = [1, 1]} : vector<32x1xf32> to vector<16x1xf32>
    %55 = vector.extract_strided_slice %42 {offsets = [0, 0], sizes = [16, 1], strides = [1, 1]} : vector<32x1xf32> to vector<16x1xf32>
    %56 = vector.extract_strided_slice %39 {offsets = [16, 0], sizes = [16, 1], strides = [1, 1]} : vector<32x1xf32> to vector<16x1xf32>
    %57 = arith.addf %54, %56 : vector<16x1xf32>
    %58 = vector.extract_strided_slice %42 {offsets = [16, 0], sizes = [16, 1], strides = [1, 1]} : vector<32x1xf32> to vector<16x1xf32>
    %59 = arith.addf %55, %58 : vector<16x1xf32>
    %cst_28 = arith.constant 0.001953125 : f32
    %60 = vector.broadcast %cst_28 : f32 to vector<16x1xf32>
    %61 = arith.mulf %57, %60 : vector<16x1xf32>
    %cst_29 = arith.constant 0.001953125 : f32
    %62 = vector.broadcast %cst_29 : f32 to vector<16x1xf32>
    %63 = arith.mulf %59, %62 : vector<16x1xf32>
    %64 = arith.mulf %61, %61 : vector<16x1xf32>
    %65 = arith.subf %63, %64 : vector<16x1xf32>
    %cst_30 = arith.constant 0.000000e+00 : f32
    %66 = vector.broadcast %cst_30 : f32 to vector<16x1xf32>
    %67 = arith.maximumf %65, %66 : vector<16x1xf32>
    %cst_31 = arith.constant 9.99999974E-6 : f32
    %68 = vector.broadcast %cst_31 : f32 to vector<16x1xf32>
    %69 = arith.addf %67, %68 : vector<16x1xf32>
    %70 = math.rsqrt %69 : vector<16x1xf32>
    %c17_i32 = arith.constant 17 : i32
    %71 = tpu.dynamic_rotate %0 by %c17_i32 dim 1 : vector<32x256xf32>, i32 -> vector<32x256xf32>
    %72 = vector.extract_strided_slice %10 {offsets = [0, 0], sizes = [1, 256], strides = [1, 1]} : vector<9x256xf32> to vector<1x256xf32>
    %73 = vector.broadcast %72 : vector<1x256xf32> to vector<32x256xf32>
    %74 = arith.mulf %71, %73 : vector<32x256xf32>
    %c16_i32 = arith.constant 16 : i32
    %75 = tpu.dynamic_rotate %0 by %c16_i32 dim 1 : vector<32x256xf32>, i32 -> vector<32x256xf32>
    %76 = vector.extract_strided_slice %10 {offsets = [1, 0], sizes = [1, 256], strides = [1, 1]} : vector<9x256xf32> to vector<1x256xf32>
    %77 = vector.broadcast %76 : vector<1x256xf32> to vector<32x256xf32>
    %78 = arith.mulf %75, %77 : vector<32x256xf32>
    %c15_i32 = arith.constant 15 : i32
    %79 = tpu.dynamic_rotate %0 by %c15_i32 dim 1 : vector<32x256xf32>, i32 -> vector<32x256xf32>
    %80 = vector.extract_strided_slice %10 {offsets = [2, 0], sizes = [1, 256], strides = [1, 1]} : vector<9x256xf32> to vector<1x256xf32>
    %81 = vector.broadcast %80 : vector<1x256xf32> to vector<32x256xf32>
    %82 = arith.mulf %79, %81 : vector<32x256xf32>
    %c1_i32 = arith.constant 1 : i32
    %83 = tpu.dynamic_rotate %0 by %c1_i32 dim 1 : vector<32x256xf32>, i32 -> vector<32x256xf32>
    %84 = vector.extract_strided_slice %10 {offsets = [3, 0], sizes = [1, 256], strides = [1, 1]} : vector<9x256xf32> to vector<1x256xf32>
    %85 = vector.broadcast %84 : vector<1x256xf32> to vector<32x256xf32>
    %86 = arith.mulf %83, %85 : vector<32x256xf32>
    %c255_i32 = arith.constant 255 : i32
    %87 = tpu.dynamic_rotate %0 by %c255_i32 dim 1 : vector<32x256xf32>, i32 -> vector<32x256xf32>
    %88 = vector.extract_strided_slice %10 {offsets = [5, 0], sizes = [1, 256], strides = [1, 1]} : vector<9x256xf32> to vector<1x256xf32>
    %89 = vector.broadcast %88 : vector<1x256xf32> to vector<32x256xf32>
    %90 = arith.mulf %87, %89 : vector<32x256xf32>
    %c241_i32 = arith.constant 241 : i32
    %91 = tpu.dynamic_rotate %0 by %c241_i32 dim 1 : vector<32x256xf32>, i32 -> vector<32x256xf32>
    %92 = vector.extract_strided_slice %10 {offsets = [6, 0], sizes = [1, 256], strides = [1, 1]} : vector<9x256xf32> to vector<1x256xf32>
    %93 = vector.broadcast %92 : vector<1x256xf32> to vector<32x256xf32>
    %94 = arith.mulf %91, %93 : vector<32x256xf32>
    %c240_i32 = arith.constant 240 : i32
    %95 = tpu.dynamic_rotate %0 by %c240_i32 dim 1 : vector<32x256xf32>, i32 -> vector<32x256xf32>
    %96 = vector.extract_strided_slice %10 {offsets = [7, 0], sizes = [1, 256], strides = [1, 1]} : vector<9x256xf32> to vector<1x256xf32>
    %97 = vector.broadcast %96 : vector<1x256xf32> to vector<32x256xf32>
    %98 = arith.mulf %95, %97 : vector<32x256xf32>
    %c239_i32 = arith.constant 239 : i32
    %99 = tpu.dynamic_rotate %0 by %c239_i32 dim 1 : vector<32x256xf32>, i32 -> vector<32x256xf32>
    %100 = vector.extract_strided_slice %10 {offsets = [8, 0], sizes = [1, 256], strides = [1, 1]} : vector<9x256xf32> to vector<1x256xf32>
    %101 = vector.broadcast %100 : vector<1x256xf32> to vector<32x256xf32>
    %102 = arith.mulf %99, %101 : vector<32x256xf32>
    %103 = vector.extract_strided_slice %0 {offsets = [0, 0], sizes = [16, 256], strides = [1, 1]} : vector<32x256xf32> to vector<16x256xf32>
    %104 = vector.extract_strided_slice %37 {offsets = [0, 0], sizes = [16, 256], strides = [1, 1]} : vector<32x256xf32> to vector<16x256xf32>
    %105 = vector.extract_strided_slice %44 {offsets = [0, 0], sizes = [16, 1], strides = [1, 1]} : vector<32x1xf32> to vector<16x1xf32>
    %106 = vector.broadcast %105 : vector<16x1xf32> to vector<16x256xf32>
    %107 = arith.subf %104, %106 : vector<16x256xf32>
    %108 = vector.extract_strided_slice %53 {offsets = [0, 0], sizes = [16, 1], strides = [1, 1]} : vector<32x1xf32> to vector<16x1xf32>
    %109 = vector.broadcast %108 : vector<16x1xf32> to vector<16x256xf32>
    %110 = arith.mulf %107, %109 : vector<16x256xf32>
    %111 = vector.broadcast %4 : vector<16x1xf32> to vector<16x256xf32>
    %112 = arith.mulf %110, %111 : vector<16x256xf32>
    %113 = vector.broadcast %5 : vector<16x1xf32> to vector<16x256xf32>
    %114 = arith.addf %112, %113 : vector<16x256xf32>
    %115 = vector.broadcast %61 : vector<16x1xf32> to vector<16x256xf32>
    %116 = arith.subf %104, %115 : vector<16x256xf32>
    %117 = vector.broadcast %70 : vector<16x1xf32> to vector<16x256xf32>
    %118 = arith.mulf %116, %117 : vector<16x256xf32>
    %119 = vector.extract_strided_slice %74 {offsets = [0, 0], sizes = [16, 256], strides = [1, 1]} : vector<32x256xf32> to vector<16x256xf32>
    %120 = vector.extract_strided_slice %78 {offsets = [0, 0], sizes = [16, 256], strides = [1, 1]} : vector<32x256xf32> to vector<16x256xf32>
    %121 = vector.extract_strided_slice %82 {offsets = [0, 0], sizes = [16, 256], strides = [1, 1]} : vector<32x256xf32> to vector<16x256xf32>
    %122 = vector.extract_strided_slice %86 {offsets = [0, 0], sizes = [16, 256], strides = [1, 1]} : vector<32x256xf32> to vector<16x256xf32>
    %123 = vector.extract_strided_slice %0 {offsets = [0, 0], sizes = [16, 256], strides = [1, 1]} : vector<32x256xf32> to vector<16x256xf32>
    %124 = vector.extract_strided_slice %90 {offsets = [0, 0], sizes = [16, 256], strides = [1, 1]} : vector<32x256xf32> to vector<16x256xf32>
    %125 = vector.extract_strided_slice %94 {offsets = [0, 0], sizes = [16, 256], strides = [1, 1]} : vector<32x256xf32> to vector<16x256xf32>
    %126 = vector.extract_strided_slice %98 {offsets = [0, 0], sizes = [16, 256], strides = [1, 1]} : vector<32x256xf32> to vector<16x256xf32>
    %127 = vector.extract_strided_slice %102 {offsets = [0, 0], sizes = [16, 256], strides = [1, 1]} : vector<32x256xf32> to vector<16x256xf32>
    %128 = tpu.concatenate %119, %120, %121, %122, %123, %124, %125, %126, %127 in 0 : vector<16x256xf32>, vector<16x256xf32>, vector<16x256xf32>, vector<16x256xf32>, vector<16x256xf32>, vector<16x256xf32>, vector<16x256xf32>, vector<16x256xf32>, vector<16x256xf32> -> vector<144x256xf32>
    %cst_32 = arith.constant dense<0.000000e+00> : vector<32x256xf32>
    %129 = tpu.matmul %7, %128, %cst_32 {dimension_numbers = #tpu.dot_dimension_numbers<[1], [0], [0], [1], [0, 0, 1, 1], [], []>} : vector<32x144xf32>, vector<144x256xf32>, vector<32x256xf32> -> vector<32x256xf32>
    %130 = vector.broadcast %2 : vector<32x1xf32> to vector<32x256xf32>
    %131 = arith.addf %129, %130 : vector<32x256xf32>
    %132 = vector.extract_strided_slice %131 {offsets = [0, 0], sizes = [16, 256], strides = [1, 1]} : vector<32x256xf32> to vector<16x256xf32>
    %133 = vector.extract_strided_slice %131 {offsets = [16, 0], sizes = [16, 256], strides = [1, 1]} : vector<32x256xf32> to vector<16x256xf32>
    %cst_33 = arith.constant dense<0.000000e+00> : vector<16xf32>
    %134 = vector.multi_reduction <add>, %114, %cst_33 [1] : vector<16x256xf32> to vector<16xf32>
    %135 = vector.shape_cast %134 : vector<16xf32> to vector<16x1xf32>
    %cst_34 = arith.constant 3.906250e-03 : f32
    %136 = vector.broadcast %cst_34 : f32 to vector<16x1xf32>
    %137 = arith.mulf %135, %136 : vector<16x1xf32>
    %cst_35 = arith.constant dense<0.000000e+00> : vector<16xf32>
    %138 = vector.multi_reduction <add>, %132, %cst_35 [1] : vector<16x256xf32> to vector<16xf32>
    %139 = vector.shape_cast %138 : vector<16xf32> to vector<16x1xf32>
    %cst_36 = arith.constant 3.906250e-03 : f32
    %140 = vector.broadcast %cst_36 : f32 to vector<16x1xf32>
    %141 = arith.mulf %139, %140 : vector<16x1xf32>
    %cst_37 = arith.constant dense<0xFF800000> : vector<1xf32>
    %142 = vector.multi_reduction <maximumf>, %137, %cst_37 [0] : vector<16x1xf32> to vector<1xf32>
    %143 = vector.shape_cast %142 : vector<1xf32> to vector<1x1xf32>
    %144 = vector.broadcast %143 : vector<1x1xf32> to vector<16x1xf32>
    %145 = arith.subf %137, %144 : vector<16x1xf32>
    %146 = math.exp %145 : vector<16x1xf32>
    %cst_38 = arith.constant dense<0xFF800000> : vector<1xf32>
    %147 = vector.multi_reduction <maximumf>, %141, %cst_38 [0] : vector<16x1xf32> to vector<1xf32>
    %148 = vector.shape_cast %147 : vector<1xf32> to vector<1x1xf32>
    %149 = vector.broadcast %148 : vector<1x1xf32> to vector<16x1xf32>
    %150 = arith.subf %141, %149 : vector<16x1xf32>
    %151 = math.exp %150 : vector<16x1xf32>
    %152 = vector.broadcast %146 : vector<16x1xf32> to vector<16x256xf32>
    %153 = arith.mulf %152, %132 : vector<16x256xf32>
    %154 = vector.broadcast %151 : vector<16x1xf32> to vector<16x256xf32>
    %155 = arith.mulf %154, %114 : vector<16x256xf32>
    %156 = tpu.concatenate %153, %155, %146, %151 in 1 : vector<16x256xf32>, vector<16x256xf32>, vector<16x1xf32>, vector<16x1xf32> -> vector<16x514xf32>
    %cst_39 = arith.constant dense<0.000000e+00> : vector<8x514xf32>
    %157 = tpu.matmul %8, %156, %cst_39 {dimension_numbers = #tpu.dot_dimension_numbers<[1], [0], [0], [1], [0, 0, 1, 1], [], []>} : vector<8x16xf32>, vector<16x514xf32>, vector<8x514xf32> -> vector<8x514xf32>
    %158 = vector.extract_strided_slice %157 {offsets = [0, 0], sizes = [8, 256], strides = [1, 1]} : vector<8x514xf32> to vector<8x256xf32>
    %159 = vector.extract_strided_slice %157 {offsets = [0, 512], sizes = [8, 1], strides = [1, 1]} : vector<8x514xf32> to vector<8x1xf32>
    %160 = tpu.reciprocal %159 {approx = true} : vector<8x1xf32> -> vector<8x1xf32>
    %161 = vector.broadcast %160 : vector<8x1xf32> to vector<8x256xf32>
    %162 = arith.mulf %158, %161 : vector<8x256xf32>
    %163 = vector.extract_strided_slice %157 {offsets = [0, 256], sizes = [8, 256], strides = [1, 1]} : vector<8x514xf32> to vector<8x256xf32>
    %164 = vector.extract_strided_slice %157 {offsets = [0, 513], sizes = [8, 1], strides = [1, 1]} : vector<8x514xf32> to vector<8x1xf32>
    %165 = tpu.reciprocal %164 {approx = true} : vector<8x1xf32> -> vector<8x1xf32>
    %166 = vector.broadcast %165 : vector<8x1xf32> to vector<8x256xf32>
    %167 = arith.mulf %163, %166 : vector<8x256xf32>
    %168 = arith.addf %162, %167 : vector<8x256xf32>
    %169 = arith.negf %168 : vector<8x256xf32>
    %170 = math.exp %169 : vector<8x256xf32>
    %cst_40 = arith.constant 1.000000e+00 : f32
    %171 = vector.broadcast %cst_40 : f32 to vector<8x256xf32>
    %172 = arith.addf %171, %170 : vector<8x256xf32>
    %173 = arith.divf %171, %172 : vector<8x256xf32>
    %cst_41 = arith.constant dense<0.000000e+00> : vector<16x256xf32>
    %174 = tpu.matmul %9, %173, %cst_41 {dimension_numbers = #tpu.dot_dimension_numbers<[1], [0], [0], [1], [0, 0, 1, 1], [], []>} : vector<16x8xf32>, vector<8x256xf32>, vector<16x256xf32> -> vector<16x256xf32>
    %cst_42 = arith.constant dense<0.000000e+00> : vector<256xf32>
    %175 = vector.multi_reduction <add>, %118, %cst_42 [0] : vector<16x256xf32> to vector<256xf32>
    %176 = vector.shape_cast %175 : vector<256xf32> to vector<1x256xf32>
    %cst_43 = arith.constant 1.600000e+01 : f32
    %177 = vector.broadcast %cst_43 : f32 to vector<1x256xf32>
    %178 = arith.divf %176, %177 : vector<1x256xf32>
    %cst_44 = arith.constant dense<0.000000e+00> : vector<256xf32>
    %179 = vector.multi_reduction <add>, %133, %cst_44 [0] : vector<16x256xf32> to vector<256xf32>
    %180 = vector.shape_cast %179 : vector<256xf32> to vector<1x256xf32>
    %cst_45 = arith.constant 1.600000e+01 : f32
    %181 = vector.broadcast %cst_45 : f32 to vector<1x256xf32>
    %182 = arith.divf %180, %181 : vector<1x256xf32>
    %cst_46 = arith.constant dense<0xFF800000> : vector<1xf32>
    %183 = vector.multi_reduction <maximumf>, %178, %cst_46 [1] : vector<1x256xf32> to vector<1xf32>
    %184 = vector.shape_cast %183 : vector<1xf32> to vector<1x1xf32>
    %185 = vector.broadcast %184 : vector<1x1xf32> to vector<1x256xf32>
    %186 = arith.subf %178, %185 : vector<1x256xf32>
    %187 = math.exp %186 : vector<1x256xf32>
    %cst_47 = arith.constant dense<0xFF800000> : vector<1xf32>
    %188 = vector.multi_reduction <maximumf>, %182, %cst_47 [1] : vector<1x256xf32> to vector<1xf32>
    %189 = vector.shape_cast %188 : vector<1xf32> to vector<1x1xf32>
    %190 = vector.broadcast %189 : vector<1x1xf32> to vector<1x256xf32>
    %191 = arith.subf %182, %190 : vector<1x256xf32>
    %192 = math.exp %191 : vector<1x256xf32>
    %cst_48 = arith.constant dense<0.000000e+00> : vector<1xf32>
    %193 = vector.multi_reduction <add>, %187, %cst_48 [1] : vector<1x256xf32> to vector<1xf32>
    %194 = vector.shape_cast %193 : vector<1xf32> to vector<1x1xf32>
    %195 = tpu.reciprocal %194 {approx = true} : vector<1x1xf32> -> vector<1x1xf32>
    %196 = vector.broadcast %195 : vector<1x1xf32> to vector<1x256xf32>
    %197 = arith.mulf %187, %196 : vector<1x256xf32>
    %cst_49 = arith.constant dense<0.000000e+00> : vector<1xf32>
    %198 = vector.multi_reduction <add>, %192, %cst_49 [1] : vector<1x256xf32> to vector<1xf32>
    %199 = vector.shape_cast %198 : vector<1xf32> to vector<1x1xf32>
    %200 = tpu.reciprocal %199 {approx = true} : vector<1x1xf32> -> vector<1x1xf32>
    %201 = vector.broadcast %200 : vector<1x1xf32> to vector<1x256xf32>
    %202 = arith.mulf %192, %201 : vector<1x256xf32>
    %203 = vector.broadcast %197 : vector<1x256xf32> to vector<16x256xf32>
    %204 = arith.mulf %203, %133 : vector<16x256xf32>
    %205 = vector.broadcast %202 : vector<1x256xf32> to vector<16x256xf32>
    %206 = arith.mulf %205, %118 : vector<16x256xf32>
    %207 = arith.addf %204, %206 : vector<16x256xf32>
    %cst_50 = arith.constant dense<0.000000e+00> : vector<16xf32>
    %208 = vector.multi_reduction <add>, %207, %cst_50 [1] : vector<16x256xf32> to vector<16xf32>
    %209 = vector.shape_cast %208 : vector<16xf32> to vector<16x1xf32>
    %210 = arith.negf %209 : vector<16x1xf32>
    %211 = math.exp %210 : vector<16x1xf32>
    %cst_51 = arith.constant 1.000000e+00 : f32
    %212 = vector.broadcast %cst_51 : f32 to vector<16x1xf32>
    %213 = arith.addf %212, %211 : vector<16x1xf32>
    %214 = arith.divf %212, %213 : vector<16x1xf32>
    %215 = vector.broadcast %214 : vector<16x1xf32> to vector<16x256xf32>
    %216 = arith.addf %174, %215 : vector<16x256xf32>
    %217 = arith.mulf %103, %216 : vector<16x256xf32>
    %c0_52 = arith.constant 0 : index
    %c0_53 = arith.constant 0 : index
    %218 = vector.load %arg9[%c0_52, %c0_53] : memref<32x256xf32, #tpu.memory_space<vmem>>, vector<16x256xf32>
    tpu.vector_store %arg9[%c0_52, %c0_53], %217 {strides = array<i32>} : memref<32x256xf32, #tpu.memory_space<vmem>>, vector<16x256xf32>,
    %219 = vector.extract_strided_slice %0 {offsets = [16, 0], sizes = [16, 256], strides = [1, 1]} : vector<32x256xf32> to vector<16x256xf32>
    %220 = vector.extract_strided_slice %37 {offsets = [16, 0], sizes = [16, 256], strides = [1, 1]} : vector<32x256xf32> to vector<16x256xf32>
    %221 = vector.extract_strided_slice %44 {offsets = [16, 0], sizes = [16, 1], strides = [1, 1]} : vector<32x1xf32> to vector<16x1xf32>
    %222 = vector.broadcast %221 : vector<16x1xf32> to vector<16x256xf32>
    %223 = arith.subf %220, %222 : vector<16x256xf32>
    %224 = vector.extract_strided_slice %53 {offsets = [16, 0], sizes = [16, 1], strides = [1, 1]} : vector<32x1xf32> to vector<16x1xf32>
    %225 = vector.broadcast %224 : vector<16x1xf32> to vector<16x256xf32>
    %226 = arith.mulf %223, %225 : vector<16x256xf32>
    %227 = vector.broadcast %4 : vector<16x1xf32> to vector<16x256xf32>
    %228 = arith.mulf %226, %227 : vector<16x256xf32>
    %229 = vector.broadcast %5 : vector<16x1xf32> to vector<16x256xf32>
    %230 = arith.addf %228, %229 : vector<16x256xf32>
    %231 = vector.broadcast %61 : vector<16x1xf32> to vector<16x256xf32>
    %232 = arith.subf %220, %231 : vector<16x256xf32>
    %233 = vector.broadcast %70 : vector<16x1xf32> to vector<16x256xf32>
    %234 = arith.mulf %232, %233 : vector<16x256xf32>
    %235 = vector.extract_strided_slice %74 {offsets = [16, 0], sizes = [16, 256], strides = [1, 1]} : vector<32x256xf32> to vector<16x256xf32>
    %236 = vector.extract_strided_slice %78 {offsets = [16, 0], sizes = [16, 256], strides = [1, 1]} : vector<32x256xf32> to vector<16x256xf32>
    %237 = vector.extract_strided_slice %82 {offsets = [16, 0], sizes = [16, 256], strides = [1, 1]} : vector<32x256xf32> to vector<16x256xf32>
    %238 = vector.extract_strided_slice %86 {offsets = [16, 0], sizes = [16, 256], strides = [1, 1]} : vector<32x256xf32> to vector<16x256xf32>
    %239 = vector.extract_strided_slice %0 {offsets = [16, 0], sizes = [16, 256], strides = [1, 1]} : vector<32x256xf32> to vector<16x256xf32>
    %240 = vector.extract_strided_slice %90 {offsets = [16, 0], sizes = [16, 256], strides = [1, 1]} : vector<32x256xf32> to vector<16x256xf32>
    %241 = vector.extract_strided_slice %94 {offsets = [16, 0], sizes = [16, 256], strides = [1, 1]} : vector<32x256xf32> to vector<16x256xf32>
    %242 = vector.extract_strided_slice %98 {offsets = [16, 0], sizes = [16, 256], strides = [1, 1]} : vector<32x256xf32> to vector<16x256xf32>
    %243 = vector.extract_strided_slice %102 {offsets = [16, 0], sizes = [16, 256], strides = [1, 1]} : vector<32x256xf32> to vector<16x256xf32>
    %244 = tpu.concatenate %235, %236, %237, %238, %239, %240, %241, %242, %243 in 0 : vector<16x256xf32>, vector<16x256xf32>, vector<16x256xf32>, vector<16x256xf32>, vector<16x256xf32>, vector<16x256xf32>, vector<16x256xf32>, vector<16x256xf32>, vector<16x256xf32> -> vector<144x256xf32>
    %cst_54 = arith.constant dense<0.000000e+00> : vector<32x256xf32>
    %245 = tpu.matmul %7, %244, %cst_54 {dimension_numbers = #tpu.dot_dimension_numbers<[1], [0], [0], [1], [0, 0, 1, 1], [], []>} : vector<32x144xf32>, vector<144x256xf32>, vector<32x256xf32> -> vector<32x256xf32>
    %246 = vector.broadcast %2 : vector<32x1xf32> to vector<32x256xf32>
    %247 = arith.addf %245, %246 : vector<32x256xf32>
    %248 = vector.extract_strided_slice %247 {offsets = [0, 0], sizes = [16, 256], strides = [1, 1]} : vector<32x256xf32> to vector<16x256xf32>
    %249 = vector.extract_strided_slice %247 {offsets = [16, 0], sizes = [16, 256], strides = [1, 1]} : vector<32x256xf32> to vector<16x256xf32>
    %cst_55 = arith.constant dense<0.000000e+00> : vector<16xf32>
    %250 = vector.multi_reduction <add>, %230, %cst_55 [1] : vector<16x256xf32> to vector<16xf32>
    %251 = vector.shape_cast %250 : vector<16xf32> to vector<16x1xf32>
    %cst_56 = arith.constant 3.906250e-03 : f32
    %252 = vector.broadcast %cst_56 : f32 to vector<16x1xf32>
    %253 = arith.mulf %251, %252 : vector<16x1xf32>
    %cst_57 = arith.constant dense<0.000000e+00> : vector<16xf32>
    %254 = vector.multi_reduction <add>, %248, %cst_57 [1] : vector<16x256xf32> to vector<16xf32>
    %255 = vector.shape_cast %254 : vector<16xf32> to vector<16x1xf32>
    %cst_58 = arith.constant 3.906250e-03 : f32
    %256 = vector.broadcast %cst_58 : f32 to vector<16x1xf32>
    %257 = arith.mulf %255, %256 : vector<16x1xf32>
    %cst_59 = arith.constant dense<0xFF800000> : vector<1xf32>
    %258 = vector.multi_reduction <maximumf>, %253, %cst_59 [0] : vector<16x1xf32> to vector<1xf32>
    %259 = vector.shape_cast %258 : vector<1xf32> to vector<1x1xf32>
    %260 = vector.broadcast %259 : vector<1x1xf32> to vector<16x1xf32>
    %261 = arith.subf %253, %260 : vector<16x1xf32>
    %262 = math.exp %261 : vector<16x1xf32>
    %cst_60 = arith.constant dense<0xFF800000> : vector<1xf32>
    %263 = vector.multi_reduction <maximumf>, %257, %cst_60 [0] : vector<16x1xf32> to vector<1xf32>
    %264 = vector.shape_cast %263 : vector<1xf32> to vector<1x1xf32>
    %265 = vector.broadcast %264 : vector<1x1xf32> to vector<16x1xf32>
    %266 = arith.subf %257, %265 : vector<16x1xf32>
    %267 = math.exp %266 : vector<16x1xf32>
    %268 = vector.broadcast %262 : vector<16x1xf32> to vector<16x256xf32>
    %269 = arith.mulf %268, %248 : vector<16x256xf32>
    %270 = vector.broadcast %267 : vector<16x1xf32> to vector<16x256xf32>
    %271 = arith.mulf %270, %230 : vector<16x256xf32>
    %272 = tpu.concatenate %269, %271, %262, %267 in 1 : vector<16x256xf32>, vector<16x256xf32>, vector<16x1xf32>, vector<16x1xf32> -> vector<16x514xf32>
    %cst_61 = arith.constant dense<0.000000e+00> : vector<8x514xf32>
    %273 = tpu.matmul %8, %272, %cst_61 {dimension_numbers = #tpu.dot_dimension_numbers<[1], [0], [0], [1], [0, 0, 1, 1], [], []>} : vector<8x16xf32>, vector<16x514xf32>, vector<8x514xf32> -> vector<8x514xf32>
    %274 = vector.extract_strided_slice %273 {offsets = [0, 0], sizes = [8, 256], strides = [1, 1]} : vector<8x514xf32> to vector<8x256xf32>
    %275 = vector.extract_strided_slice %273 {offsets = [0, 512], sizes = [8, 1], strides = [1, 1]} : vector<8x514xf32> to vector<8x1xf32>
    %276 = tpu.reciprocal %275 {approx = true} : vector<8x1xf32> -> vector<8x1xf32>
    %277 = vector.broadcast %276 : vector<8x1xf32> to vector<8x256xf32>
    %278 = arith.mulf %274, %277 : vector<8x256xf32>
    %279 = vector.extract_strided_slice %273 {offsets = [0, 256], sizes = [8, 256], strides = [1, 1]} : vector<8x514xf32> to vector<8x256xf32>
    %280 = vector.extract_strided_slice %273 {offsets = [0, 513], sizes = [8, 1], strides = [1, 1]} : vector<8x514xf32> to vector<8x1xf32>
    %281 = tpu.reciprocal %280 {approx = true} : vector<8x1xf32> -> vector<8x1xf32>
    %282 = vector.broadcast %281 : vector<8x1xf32> to vector<8x256xf32>
    %283 = arith.mulf %279, %282 : vector<8x256xf32>
    %284 = arith.addf %278, %283 : vector<8x256xf32>
    %285 = arith.negf %284 : vector<8x256xf32>
    %286 = math.exp %285 : vector<8x256xf32>
    %cst_62 = arith.constant 1.000000e+00 : f32
    %287 = vector.broadcast %cst_62 : f32 to vector<8x256xf32>
    %288 = arith.addf %287, %286 : vector<8x256xf32>
    %289 = arith.divf %287, %288 : vector<8x256xf32>
    %cst_63 = arith.constant dense<0.000000e+00> : vector<16x256xf32>
    %290 = tpu.matmul %9, %289, %cst_63 {dimension_numbers = #tpu.dot_dimension_numbers<[1], [0], [0], [1], [0, 0, 1, 1], [], []>} : vector<16x8xf32>, vector<8x256xf32>, vector<16x256xf32> -> vector<16x256xf32>
    %cst_64 = arith.constant dense<0.000000e+00> : vector<256xf32>
    %291 = vector.multi_reduction <add>, %234, %cst_64 [0] : vector<16x256xf32> to vector<256xf32>
    %292 = vector.shape_cast %291 : vector<256xf32> to vector<1x256xf32>
    %cst_65 = arith.constant 1.600000e+01 : f32
    %293 = vector.broadcast %cst_65 : f32 to vector<1x256xf32>
    %294 = arith.divf %292, %293 : vector<1x256xf32>
    %cst_66 = arith.constant dense<0.000000e+00> : vector<256xf32>
    %295 = vector.multi_reduction <add>, %249, %cst_66 [0] : vector<16x256xf32> to vector<256xf32>
    %296 = vector.shape_cast %295 : vector<256xf32> to vector<1x256xf32>
    %cst_67 = arith.constant 1.600000e+01 : f32
    %297 = vector.broadcast %cst_67 : f32 to vector<1x256xf32>
    %298 = arith.divf %296, %297 : vector<1x256xf32>
    %cst_68 = arith.constant dense<0xFF800000> : vector<1xf32>
    %299 = vector.multi_reduction <maximumf>, %294, %cst_68 [1] : vector<1x256xf32> to vector<1xf32>
    %300 = vector.shape_cast %299 : vector<1xf32> to vector<1x1xf32>
    %301 = vector.broadcast %300 : vector<1x1xf32> to vector<1x256xf32>
    %302 = arith.subf %294, %301 : vector<1x256xf32>
    %303 = math.exp %302 : vector<1x256xf32>
    %cst_69 = arith.constant dense<0xFF800000> : vector<1xf32>
    %304 = vector.multi_reduction <maximumf>, %298, %cst_69 [1] : vector<1x256xf32> to vector<1xf32>
    %305 = vector.shape_cast %304 : vector<1xf32> to vector<1x1xf32>
    %306 = vector.broadcast %305 : vector<1x1xf32> to vector<1x256xf32>
    %307 = arith.subf %298, %306 : vector<1x256xf32>
    %308 = math.exp %307 : vector<1x256xf32>
    %cst_70 = arith.constant dense<0.000000e+00> : vector<1xf32>
    %309 = vector.multi_reduction <add>, %303, %cst_70 [1] : vector<1x256xf32> to vector<1xf32>
    %310 = vector.shape_cast %309 : vector<1xf32> to vector<1x1xf32>
    %311 = tpu.reciprocal %310 {approx = true} : vector<1x1xf32> -> vector<1x1xf32>
    %312 = vector.broadcast %311 : vector<1x1xf32> to vector<1x256xf32>
    %313 = arith.mulf %303, %312 : vector<1x256xf32>
    %cst_71 = arith.constant dense<0.000000e+00> : vector<1xf32>
    %314 = vector.multi_reduction <add>, %308, %cst_71 [1] : vector<1x256xf32> to vector<1xf32>
    %315 = vector.shape_cast %314 : vector<1xf32> to vector<1x1xf32>
    %316 = tpu.reciprocal %315 {approx = true} : vector<1x1xf32> -> vector<1x1xf32>
    %317 = vector.broadcast %316 : vector<1x1xf32> to vector<1x256xf32>
    %318 = arith.mulf %308, %317 : vector<1x256xf32>
    %319 = vector.broadcast %313 : vector<1x256xf32> to vector<16x256xf32>
    %320 = arith.mulf %319, %249 : vector<16x256xf32>
    %321 = vector.broadcast %318 : vector<1x256xf32> to vector<16x256xf32>
    %322 = arith.mulf %321, %234 : vector<16x256xf32>
    %323 = arith.addf %320, %322 : vector<16x256xf32>
    %cst_72 = arith.constant dense<0.000000e+00> : vector<16xf32>
    %324 = vector.multi_reduction <add>, %323, %cst_72 [1] : vector<16x256xf32> to vector<16xf32>
    %325 = vector.shape_cast %324 : vector<16xf32> to vector<16x1xf32>
    %326 = arith.negf %325 : vector<16x1xf32>
    %327 = math.exp %326 : vector<16x1xf32>
    %cst_73 = arith.constant 1.000000e+00 : f32
    %328 = vector.broadcast %cst_73 : f32 to vector<16x1xf32>
    %329 = arith.addf %328, %327 : vector<16x1xf32>
    %330 = arith.divf %328, %329 : vector<16x1xf32>
    %331 = vector.broadcast %330 : vector<16x1xf32> to vector<16x256xf32>
    %332 = arith.addf %290, %331 : vector<16x256xf32>
    %333 = arith.mulf %219, %332 : vector<16x256xf32>
    %c16 = arith.constant 16 : index
    %c0_74 = arith.constant 0 : index
    %334 = vector.load %arg9[%c16, %c0_74] : memref<32x256xf32, #tpu.memory_space<vmem>>, vector<16x256xf32>
    tpu.vector_store %arg9[%c16, %c0_74], %333 {strides = array<i32>} : memref<32x256xf32, #tpu.memory_space<vmem>>, vector<16x256xf32>,
    return
  }
}

</mosaic_0001>

<bundles_post_ra>
// kernel: pcsa_pallas.1
= control target key start
LH: loop header
LB: loop body
LE: loop exit
PB: predicated region body
PF: predicated region fallthrough
CT: control target
= control target key end

     0   :  { %vm188_vm0 = vcmask 130048   ;;  %v3756_v41 = vmov 1   ;;  %s2498_s29 = smov 112   ;;  %s2499_s11 = smov 113   ;;  %v3767_v63 = vmov 0.0   ;;  %vm385_vm9 = vcmask 261120   ;;  %s3746_s4 = inlined_call_operand.vmem [shape: f32[256,32], index: 4, kind: input, shape index: {}]   ;;  %s3747_s0 = inlined_call_operand.vmem [shape: f32[32,256], index: 0, kind: input, shape index: {}]   ;;  %s3748_s1 = inlined_call_operand.vmem [shape: f32[16,16], index: 1, kind: input, shape index: {}]   ;;  %s3749_s3 = inlined_call_operand.vmem [shape: f32[32,4], index: 3, kind: input, shape index: {}]   ;;  %s3750_s5 = inlined_call_operand.vmem [shape: f32[32,512], index: 5, kind: input, shape index: {}]   ;;  %s3751_s8 = inlined_call_operand.vmem [shape: f32[9,256], index: 8, kind: input, shape index: {}]   ;;  %s3752_s2 = inlined_call_operand.vmem [shape: f32[32,144], index: 2, kind: input, shape index: {}]   ;;  %s3753_s6 = inlined_call_operand.vmem [shape: f32[8,16], index: 6, kind: input, shape index: {}]   ;;  %s3754_s7 = inlined_call_operand.vmem [shape: f32[16,8], index: 7, kind: input, shape index: {}]   ;;  %s3755_s9 = inlined_call_operand.vmem [shape: f32[32,256], index: 9, kind: output, shape index: {}]  }
   0x1   :  { %v92_v0 = vld [vmem:[%s3746_s4 + $0xf8] sm:$0xff]  ;;  %v91_v2 = vld [vmem:[%s3746_s4 + $0xf0] sm:$0xff]  ;;  %v90_v4 = vld [vmem:[%s3746_s4 + $0xe8] sm:$0xff]  ;;  %2370 = vset.pattern.permute.xlu0 %v3756_v41  ;;  %s2500_s12 = smov 127   ;;  %s2501_s13 = smov 1   ;;  %vm2510_vm10 = vmmov 0  }
   0x2   :  { %v76_v1 = vld [vmem:[%s3746_s4 + $0x78] sm:$0xff]  ;;  %2270 = vmatprep.subr.mxu0 %v92_v0  ;;  %v75_v3 = vld [vmem:[%s3746_s4 + $0x70] sm:$0xff]  ;;  %v74_v5 = vld [vmem:[%s3746_s4 + $0x68] sm:$0xff]  ;;  %s2502_s16 = smov 15   ;;  %s2504_s17 = smov 17   ;;  %vm1209_vm11 = vcmask 7168  }
   0x3   :  { %2271 = vmatpush3.msra.mxu0 %v76_v1  ;;  %v89_v6 = vld [vmem:[%s3746_s4 + $0xe0] sm:$0xff]  ;;  %v88_v8 = vld [vmem:[%s3746_s4 + $0xd8] sm:$0xff]  ;;  %v87_v10 = vld [vmem:[%s3746_s4 + $0xd0] sm:$0xff]  ;;  %vm1548_vm12 = vcmask 64512  }
   0x4   :  { %2272 = vmatprep.subr.mxu0 %v91_v2  ;;  %v73_v7 = vld [vmem:[%s3746_s4 + $0x60] sm:$0xff]  ;;  %v72_v9 = vld [vmem:[%s3746_s4 + $0x58] sm:$0xff]  ;;  %v71_v11 = vld [vmem:[%s3746_s4 + $0x50] sm:$0xff] }
   0x5   :  { %2273 = vmatpush3.msra.mxu0 %v75_v3  ;;  %v86_v12 = vld [vmem:[%s3746_s4 + $0xc8] sm:$0xff]  ;;  %v85_v15 = vld [vmem:[%s3746_s4 + $0xc0] sm:$0xff]  ;;  %v84_v17 = vld [vmem:[%s3746_s4 + $0xb8] sm:$0xff] }
   0x6   :  { %2274 = vmatprep.subr.mxu0 %v90_v4  ;;  %v2603_v13 = vld [vmem:[%s3747_s0 + $0x8] sm:$0xff]  ;;  %v69_v16 = vld [vmem:[%s3746_s4 + $0x40] sm:$0xff]  ;;  %v68_v18 = vld [vmem:[%s3746_s4 + $0x38] sm:$0xff] }
   0x7   :  { %2275 = vmatpush3.msra.mxu0 %v74_v5  ;;  %v70_v14 = vld [vmem:[%s3746_s4 + $0x48] sm:$0xff]  ;;  %157 = vmatprep.mubr.f32.mxu0 %v2603_v13  ;;  %v83_v19 = vld [vmem:[%s3746_s4 + $0xb0] sm:$0xff]  ;;  %v81_v23 = vld [vmem:[%s3746_s4 + $0xa0] sm:$0xff] }
   0x8   :  { %2276 = vmatprep.subr.mxu0 %v89_v6  ;;  %v67_v20 = vld [vmem:[%s3746_s4 + $0x30] sm:$0xff]  ;;  %v82_v21 = vld [vmem:[%s3746_s4 + $0xa8] sm:$0xff]  ;;  %v65_v24 = vld [vmem:[%s3746_s4 + $0x20] sm:$0xff]  ;;  %v686_v6 = vlaneseq }
   0x9   :  { %2277 = vmatpush3.msra.mxu0 %v73_v7  ;;  %v66_v22 = vld [vmem:[%s3746_s4 + $0x28] sm:$0xff]  ;;  %v80_v25 = vld [vmem:[%s3746_s4 + $0x98] sm:$0xff]  ;;  %v79_v27 = vld [vmem:[%s3746_s4 + $0x90] sm:$0xff] }
   0xa   :  { %2278 = vmatprep.subr.mxu0 %v88_v8  ;;  %v64_v26 = vld [vmem:[%s3746_s4 + $0x18] sm:$0xff]  ;;  %v63_v28 = vld [vmem:[%s3746_s4 + $0x10] sm:$0xff]  ;;  %v78_v29 = vld [vmem:[%s3746_s4 + $0x88] sm:$0xff]  ;;  %v3758_v8 = vmov 0  }
   0xb   :  { %2279 = vmatpush3.msra.mxu0 %v72_v9  ;;  %v62_v30 = vld [vmem:[%s3746_s4 + $0x8] sm:$0xff]  ;;  %v77_v31 = vld [vmem:[%s3746_s4 + $0x80] sm:$0xff]  ;;  %v2671_v34 = vld [vmem:[%s3747_s0 + $0x18] sm:$0xff]  ;;  %2371 = vset.pattern.permute.xlu1 %v3758_v8  ;;  %v2823_v9 = vand.u32 127, %v686_v6 }
   0xc   :  { %2280 = vmatprep.subr.mxu0 %v87_v10  ;;  %v61_v32 = vld [vmem:[%s3746_s4] sm:$0xff]  ;;  %v2678_v35 = vld [vmem:[%s3747_s0 + $0x10] sm:$0xff]  ;;  %v2683_v36 = vld [vmem:[%s3747_s0 + $0x28] sm:$0xff]  ;;  %s2505_s4 = smov 111   ;;  %v2825_v10 = vshrl.u32 %v686_v6, 7 }
   0xd   :  { %2281 = vmatpush3.msra.mxu0 %v71_v11  ;;  %v2666_v33 = vld [vmem:[%s3747_s0] sm:$0xff]  ;;  %v39_v38 = vld [vmem:[%s3747_s0 + $0x38] sm:$0xff]  ;;  %v2699_v39 = vld [vmem:[%s3747_s0 + $0x30] sm:$0xff]  ;;  %920 = vrot.lane.b32.xlu1 %v2678_v35, %s2498_s29  ;;  %vm934_vm1 = vcmp.lt.s32.totalorder %v2823_v9, 112  ;;  %vm893_vm2 = vcmp.lt.s32.totalorder %v2823_v9, 113  ;;  %vm852_vm3 = vcmp.lt.s32.totalorder %v2823_v9, 127 }
   0xe   :  { %2282 = vmatprep.subr.mxu0 %v86_v12  ;;  %v2690_v37 = vld [vmem:[%s3747_s0 + $0x20] sm:$0xff]  ;;  %v2718_v43 = vld [vmem:[%s3749_s3 + $0x8] sm:$0xff]  ;;  %v384_v2 = vld [vmem:[%s3750_s5 + $0x78] sm:$0xff]  ;;  %vm811_vm4 = vcmp.lt.s32.totalorder %v2823_v9, 1  ;;  %vm770_vm5 = vcmp.lt.s32.totalorder %v2823_v9, 15  ;;  %vm729_vm6 = vcmp.lt.s32.totalorder %v2823_v9, 16 }
   0xf   :  { %2283 = vmatpush3.msra.mxu0 %v70_v14  ;;  %v44_v40 = vld [vmem:[%s3748_s1] sm:$0xff]  ;;  %v45_v52 = vld [vmem:[%s3748_s1 + $0x8] sm:$0xff]  ;;  %s2503_s1 = smov 16   ;;  %vm688_vm7 = vcmp.lt.s32.totalorder %v2823_v9, 17  ;;  %vm975_vm8 = vcmp.lt.s32.totalorder %v2823_v9, 111 }
  0x10   :  { %2284 = vmatprep.subr.mxu0 %v85_v15  ;;  %2332 = vmatprep.mubr.msk.f32.mxu1 %vm188_vm0, %v44_v40  ;;  %v2710_v42 = vld [vmem:[%s3749_s3] sm:$0xff]  ;;  %v382_v57 = vld [vmem:[%s3750_s5 + $0x68] sm:$0xff]  ;;  %v945_v15 = vsub.s32 7, %v2825_v10 }
  0x11   :  { %2285 = vmatpush3.msra.mxu0 %v69_v16  ;;  %180 = vperm.xlu0 %2370, %v2710_v42   ;;  %v381_v58 = vld [vmem:[%s3750_s5 + $0x60] sm:$0xff]  ;;  %v378_v59 = vld [vmem:[%s3750_s5 + $0x48] sm:$0xff] }
  0x12   :  { %2286 = vmatprep.subr.mxu0 %v84_v17  ;;  %928 = vrot.lane.b32.xlu1 %v2671_v34, %s2498_s29  ;;  %v377_v60 = vld [vmem:[%s3750_s5 + $0x40] sm:$0xff]  ;;  %v374_v61 = vld [vmem:[%s3750_s5 + $0x28] sm:$0xff] }
  0x13   :  { %2287 = vmatpush3.msra.mxu0 %v68_v18  ;;  %v373_v62 = vld [vmem:[%s3750_s5 + $0x20] sm:$0xff]  ;;  %v370_v0 = vld [vmem:[%s3750_s5 + $0x8] sm:$0xff] }
  0x14   :  { %2288 = vmatprep.subr.mxu0 %v83_v19  ;;  %v369_v1 = vld [vmem:[%s3750_s5] sm:$0xff]  ;;  %v47_v11 = vld [vmem:[%s3752_s2 + $0x8] sm:$0xff] }
  0x15   :  { %2289 = vmatpush3.msra.mxu0 %v67_v20  ;;  %185 = vperm.xlu0 %2370, %v2718_v43   ;;  %v2834_v12 = vld [vmem:[%s3751_s8] sm:$0xff]  ;;  %v2839_v14 = vld [vmem:[%s3751_s8 + $0x8] sm:$0xff] }
  0x16   :  { %2290 = vmatprep.subr.mxu0 %v82_v21  ;;  %926 = vrot.lane.b32.xlu1 %v2603_v13, %s2498_s29  ;;  %v2849_v20 = vrot.slane %v2834_v12, %v945_v15  ;;  %v2852_v21 = vrot.slane %v2839_v14, %v945_v15 }
  0x17   :  { %2291 = vmatpush3.msra.mxu0 %v66_v22  ;;  %v904_v22 = vsub.s32 6, %v2825_v10 }
  0x18   :  { %2292 = vmatprep.subr.mxu0 %v81_v23 }
  0x19   :  { %2293 = vmatpush3.msra.mxu0 %v65_v24  ;;  %918 = vrot.lane.b32.xlu0 %v2666_v33, %s2498_s29 }
  0x1a   :  { %2294 = vmatprep.subr.mxu0 %v80_v25  ;;  %887 = vrot.lane.b32.xlu1 %v2671_v34, %s2499_s11 }
  0x1b   :  { %2295 = vmatpush3.msra.mxu0 %v64_v26  ;;  %2372 = vset.pattern.permute.xlu0 %v3758_v8 }
  0x1c   :  { %2296 = vmatprep.subr.mxu0 %v79_v27 }
  0x1d   :  { %2297 = vmatpush3.msra.mxu0 %v63_v28  ;;  %879 = vrot.lane.b32.xlu0 %v2678_v35, %s2499_s11 }
  0x1e   :  { %2298 = vmatprep.subr.mxu0 %v78_v29  ;;  %885 = vrot.lane.b32.xlu1 %v2603_v13, %s2499_s11 }
  0x1f   :  { %2299 = vmatpush3.msra.mxu0 %v62_v30 }
  0x20   :  { %2300 = vmatprep.subr.mxu0 %v77_v31  ;;  %v2865_v31 = vrot.slane %v2834_v12, %v904_v22 }
  0x21   :  { %2301 = vmatpush3.msra.mxu0 %v61_v32  ;;  %877 = vrot.lane.b32.xlu0 %v2666_v33, %s2499_s11  ;;  %v2868_v32 = vrot.slane %v2839_v14, %v904_v22 }
  0x22   :  { %158 = vmatmul.mubr.f32.vlgmr.msra.gmra.mxu0 %v2666_v33  ;;  %846 = vrot.lane.b32.xlu1 %v2671_v34, %s2500_s12 }
  0x23   :  { %162 = vmatprep.mubr.f32.mxu0 %v2671_v34 }
  0x25   :  { %838 = vrot.lane.b32.xlu0 %v2678_v35, %s2500_s12 }
  0x26   :  { %163 = vmatmul.mubr.f32.gmra.mxu0 %v2678_v35  ;;  %844 = vrot.lane.b32.xlu1 %v2603_v13, %s2500_s12 }
  0x27   :  { %167 = vmatprep.mubr.f32.mxu0 %v2683_v36 }
  0x29   :  { %836 = vrot.lane.b32.xlu0 %v2666_v33, %s2500_s12 }
  0x2a   :  { %168 = vmatmul.mubr.f32.gmra.mxu0 %v2690_v37  ;;  %805 = vrot.lane.b32.xlu1 %v2671_v34, %s2501_s13 }
  0x2b   :  { %172 = vmatprep.mubr.f32.mxu0 %v39_v38 }
  0x2d   :  { %797 = vrot.lane.b32.xlu0 %v2678_v35, %s2501_s13 }
  0x2e   :  { %173 = vmatmul.mubr.f32.gmra.mxu0 %v2699_v39  ;;  %803 = vrot.lane.b32.xlu1 %v2603_v13, %s2501_s13 }
  0x2f   :  { %2244 = vmatprep.mubr.msk.f32.mxu0 %vm188_vm0, %v47_v11 }
  0x31   :  { %795 = vrot.lane.b32.xlu0 %v2666_v33, %s2501_s13 }
  0x32   :  { %764 = vrot.lane.b32.xlu1 %v2671_v34, %s2502_s16 }
  0x35   :  { %756 = vrot.lane.b32.xlu0 %v2678_v35, %s2502_s16 }
  0x36   :  { %762 = vrot.lane.b32.xlu1 %v2603_v13, %s2502_s16 }
  0x39   :  { %754 = vrot.lane.b32.xlu0 %v2666_v33, %s2502_s16 }
  0x3a   :  { %723 = vrot.lane.b32.xlu1 %v2671_v34, %s2503_s1 }
  0x3d   :  { %715 = vrot.lane.b32.xlu0 %v2678_v35, %s2503_s1 }
  0x3e   :  { %721 = vrot.lane.b32.xlu1 %v2603_v13, %s2503_s1 }
  0x41   :  { %713 = vrot.lane.b32.xlu0 %v2666_v33, %s2503_s1 }
  0x42   :  { %680 = vrot.lane.b32.xlu1 %v2671_v34, %s2504_s17 }
  0x45   :  { %672 = vrot.lane.b32.xlu0 %v2678_v35, %s2504_s17 }
  0x46   :  { %678 = vrot.lane.b32.xlu1 %v2603_v13, %s2504_s17 }
  0x49   :  { %670 = vrot.lane.b32.xlu0 %v2666_v33, %s2504_s17 }
  0x4a   :  { %969 = vrot.lane.b32.xlu1 %v2671_v34, %s2505_s4 }
  0x4d   :  { %961 = vrot.lane.b32.xlu0 %v2678_v35, %s2505_s4 }
  0x4e   :  { %967 = vrot.lane.b32.xlu1 %v2603_v13, %s2505_s4 }
  0x51   :  { %959 = vrot.lane.b32.xlu0 %v2666_v33, %s2505_s4 }
  0x52   :  { %1041 = vperm.xlu1 %2371, %v2710_v42  }
  0x7f   :  { %v921_v5 = vpop.permute.xlu1 %920 }
  0x84   :  { %v929_v16 = vpop.permute.xlu1 %928 }
  0x85   :  { %v936_v18 = vsel %vm934_vm1, %v921_v5, %v929_v16  ;;  %v940_v19 = vsel %vm934_vm1, %v929_v16, %v921_v5 }
  0x86   :  { %v953_v23 = vmul.f32 %v2849_v20, %v936_v18  ;;  %v954_v26 = vmul.f32 %v2852_v21, %v940_v19 }
  0x88   :  { %v927_v24 = vpop.permute.xlu1 %926  ;;  %1070 = vmatprep.subr.mxu0 %v954_v26 }
  0x89   :  { %1071 = vmatpush1.msra.mxu0 %v953_v23 }
  0x8c   :  { %v2817_v3 = vpop.permute.xlu0 %180  ;;  %v888_v38 = vpop.permute.xlu1 %887 }
  0x90   :  { %v2819_v4 = vpop.permute.xlu0 %185 }
  0x94   :  { %v919_v7 = vpop.permute.xlu0 %918 }
  0x95   :  { %v935_v27 = vsel %vm934_vm1, %v919_v7, %v927_v24  ;;  %v939_v28 = vsel %vm934_vm1, %v927_v24, %v919_v7 }
  0x96   :  { %v951_v29 = vmul.f32 %v2849_v20, %v935_v27  ;;  %v952_v30 = vmul.f32 %v2852_v21, %v939_v28 }
  0x98   :  { %v880_v17 = vpop.permute.xlu0 %879  ;;  %1072 = vmatprep.subr.mxu0 %v952_v30 }
  0x99   :  { %1073 = vmatpush1.msra.mxu0 %v951_v29  ;;  %v781_v29 = vsub.s32 2, %v2825_v10 }
  0x9b   :  { %v2929_v30 = vrot.slane %v2834_v12, %v781_v29 }
  0x9c   :  { %v878_v25 = vpop.permute.xlu0 %877 }
  0xe2   :  { %v2302_v44 = vpop.f32.mrf.mxu0 }
  0xe4   :  { %v2303_v45 = vpop.f32.mrf.mxu0 }
  0xe5   :  { %v2304_v50 = vadd.f32 %v2303_v45, %v2302_v44  ;;  %v899_v44 = vsel %vm893_vm2, %v888_v38, %v880_v17 }
  0xe6   :  { %v2305_v46 = vpop.f32.mrf.mxu0 }
  0xe8   :  { %v2306_v47 = vpop.f32.mrf.mxu0 }
  0xe9   :  { %v2307_v48 = vadd.f32 %v2306_v47, %v2305_v46  ;;  %v913_v46 = vmul.f32 %v2868_v32, %v899_v44  ;;  %v863_v47 = vsub.s32 5, %v2825_v10 }
  0xea   :  { %v2308_v49 = vpop.f32.mrf.mxu0 }
  0xeb   :  { %2328 = vmatprep.subr.mxu1 %v2307_v48  ;;  %1074 = vmatprep.subr.mxu0 %v913_v46 }
  0xec   :  { %v2309_v51 = vpop.f32.mrf.mxu0  ;;  %2329 = vmatpush3.msra.mxu1 %v2307_v48  ;;  %v839_v48 = vpop.permute.xlu0 %838 }
  0xed   :  { %2330 = vmatprep.subr.mxu1 %v2304_v50  ;;  %v2310_v56 = vadd.f32 %v2309_v51, %v2308_v49  ;;  %v886_v49 = vpop.permute.xlu1 %885 }
  0xee   :  { %v2311_v53 = vpop.f32.mrf.mxu0  ;;  %2331 = vmatpush3.msra.mxu1 %v2304_v50  ;;  %v894_v50 = vsel %vm893_vm2, %v878_v25, %v886_v49  ;;  %v898_v51 = vsel %vm893_vm2, %v886_v49, %v878_v25  ;;  %v740_v49 = vsub.s32 1, %v2825_v10 }
  0xef   :  { %2333 = vmatmul.mubr.msk.f32.vlgmr.msra.gmra.mxu1 %vm188_vm0, %v45_v52 }
  0xf0   :  { %v2312_v54 = vpop.f32.mrf.mxu0  ;;  %2339 = vmatprep.mubr.msk.f32.mxu1 %vm188_vm0, %v44_v40  ;;  %v895_v40 = vsel %vm893_vm2, %v880_v17, %v888_v38  ;;  %v2932_v38 = vrot.slane %v2839_v14, %v781_v29 }
  0xf1   :  { %v2313_v55 = vadd.f32 %v2312_v54, %v2311_v53  ;;  %v912_v45 = vmul.f32 %v2865_v31, %v895_v40  ;;  %v911_v53 = vmul.f32 %v2868_v32, %v898_v51  ;;  %v2885_v54 = vrot.slane %v2834_v12, %v863_v47 }
  0xf3   :  { %2335 = vmatprep.subr.mxu1 %v2313_v55  ;;  %1075 = vmatpush1.msra.mxu0 %v912_v45 }
  0xf4   :  { %2336 = vmatpush3.msra.mxu1 %v2313_v55  ;;  %v2888_v55 = vrot.slane %v2839_v14, %v863_v47  ;;  %1076 = vmatprep.subr.mxu0 %v911_v53 }
  0xf5   :  { %2337 = vmatprep.subr.mxu1 %v2310_v56 }
  0xf6   :  { %2338 = vmatpush3.msra.mxu1 %v2310_v56  ;;  %v847_v56 = vpop.permute.xlu1 %846 }
  0xf7   :  { %2340 = vmatmul.mubr.msk.f32.vlgmr.msra.gmra.mxu1 %vm188_vm0, %v45_v52  ;;  %422 = vmatprep.subr.mxu1 %v382_v57  ;;  %v910_v52 = vmul.f32 %v2865_v31, %v894_v50  ;;  %v837_v57 = vpop.permute.xlu0 %836 }
  0xf8   :  { %423 = vmatpush1.msra.mxu1 %v381_v58  ;;  %462 = vmatprep.mubr.f32.mxu1 %v3767_v63  ;;  %v854_v58 = vsel %vm852_vm3, %v839_v48, %v847_v56 }
  0xf9   :  { %424 = vmatprep.subr.mxu1 %v378_v59  ;;  %v858_v59 = vsel %vm852_vm3, %v847_v56, %v839_v48  ;;  %1077 = vmatpush1.msra.mxu0 %v910_v52 }
  0xfa   :  { %425 = vmatpush1.msra.mxu1 %v377_v60  ;;  %v871_v60 = vmul.f32 %v2885_v54, %v854_v58  ;;  %v2949_v58 = vrot.slane %v2834_v12, %v740_v49 }
  0xfb   :  { %426 = vmatprep.subr.mxu1 %v374_v61  ;;  %v872_v61 = vmul.f32 %v2888_v55, %v858_v59  ;;  %v798_v11 = vpop.permute.xlu0 %797  ;;  %v2952_v59 = vrot.slane %v2839_v14, %v740_v49 }
  0xfc   :  { %427 = vmatpush1.msra.mxu1 %v373_v62  ;;  %v822_v62 = vsub.s32 3, %v2825_v10 }
  0xfd   :  { %428 = vmatprep.subr.mxu1 %v370_v0  ;;  %v845_v0 = vpop.permute.xlu1 %844  ;;  %1078 = vmatprep.subr.mxu0 %v872_v61 }
  0xfe   :  { %429 = vmatpush1.msra.mxu1 %v369_v1  ;;  %v853_v1 = vsel %vm852_vm3, %v837_v57, %v845_v0  ;;  %1079 = vmatpush1.msra.mxu0 %v871_v60  ;;  %v2905_v7 = vrot.slane %v2839_v14, %v822_v62  ;;  %v2908_v15 = vrot.slane %v2834_v12, %v822_v62 }
  0xff   :  { %511 = vmatprep.subr.mxu1 %v384_v2  ;;  %v857_v2 = vsel %vm852_vm3, %v845_v0, %v837_v57  ;;  %v869_v5 = vmul.f32 %v2885_v54, %v853_v1  ;;  %v796_v24 = vpop.permute.xlu0 %795  ;;  %v699_v1 = vsub.s32 0, %v2825_v10 }
 0x100   :  { %v870_v6 = vmul.f32 %v2888_v55, %v857_v2 }
 0x101   :  { %v806_v16 = vpop.permute.xlu1 %805 }
 0x102   :  { %1080 = vmatprep.subr.mxu0 %v870_v6  ;;  %v813_v17 = vsel %vm811_vm4, %v798_v11, %v806_v16  ;;  %v817_v18 = vsel %vm811_vm4, %v806_v16, %v798_v11 }
 0x103   :  { %1081 = vmatpush1.msra.mxu0 %v869_v5  ;;  %v831_v19 = vmul.f32 %v2905_v7, %v813_v17  ;;  %v830_v22 = vmul.f32 %v2908_v15, %v817_v18  ;;  %v757_v44 = vpop.permute.xlu0 %756 }
 0x104   :  { %1082 = vmatprep.subr.mxu0 %v2671_v34 }
 0x105   :  { %1083 = vmatpush1.msra.mxu0 %v2678_v35  ;;  %v804_v23 = vpop.permute.xlu1 %803 }
 0x106   :  { %1084 = vmatprep.subr.mxu0 %v2603_v13  ;;  %v812_v25 = vsel %vm811_vm4, %v796_v24, %v804_v23  ;;  %v816_v26 = vsel %vm811_vm4, %v804_v23, %v796_v24  ;;  %v2971_v23 = vrot.slane %v2839_v14, %v699_v1 }
 0x107   :  { %1085 = vmatpush1.msra.mxu0 %v2666_v33  ;;  %v828_v27 = vmul.f32 %v2908_v15, %v816_v26  ;;  %v829_v28 = vmul.f32 %v2905_v7, %v812_v25  ;;  %v755_v51 = vpop.permute.xlu0 %754 }
 0x108   :  { %1086 = vmatprep.subr.mxu0 %v831_v19 }
 0x109   :  { %1087 = vmatpush1.msra.mxu0 %v830_v22  ;;  %v765_v40 = vpop.permute.xlu1 %764  ;;  %v2968_v22 = vrot.slane %v2834_v12, %v699_v1 }
 0x10a   :  { %1088 = vmatprep.subr.mxu0 %v829_v28  ;;  %v772_v45 = vsel %vm770_vm5, %v757_v44, %v765_v40  ;;  %v776_v46 = vsel %vm770_vm5, %v765_v40, %v757_v44 }
 0x10b   :  { %1089 = vmatpush1.msra.mxu0 %v828_v27  ;;  %v789_v47 = vmul.f32 %v2929_v30, %v776_v46  ;;  %v790_v48 = vmul.f32 %v2932_v38, %v772_v45  ;;  %v716_v61 = vpop.permute.xlu0 %715 }
 0x10d   :  { %v763_v50 = vpop.permute.xlu1 %762  ;;  %1090 = vmatprep.subr.mxu0 %v790_v48 }
 0x10e   :  { %v771_v52 = vsel %vm770_vm5, %v755_v51, %v763_v50  ;;  %v775_v53 = vsel %vm770_vm5, %v763_v50, %v755_v51  ;;  %1091 = vmatpush1.msra.mxu0 %v789_v47 }
 0x10f   :  { %v787_v56 = vmul.f32 %v2929_v30, %v775_v53  ;;  %v788_v57 = vmul.f32 %v2932_v38, %v771_v52  ;;  %v714_v17 = vpop.permute.xlu0 %713 }
 0x111   :  { %v724_v60 = vpop.permute.xlu1 %723  ;;  %1092 = vmatprep.subr.mxu0 %v788_v57 }
 0x112   :  { %v731_v62 = vsel %vm729_vm6, %v716_v61, %v724_v60  ;;  %v735_v0 = vsel %vm729_vm6, %v724_v60, %v716_v61  ;;  %1093 = vmatpush1.msra.mxu0 %v787_v56  ;;  %v2994_v60 = vld [vmem:[%s3751_s8 + $0x10] ss:$0 sm:$0xff]  ;;  %v2999_v61 = vld [vmem:[%s3751_s8 + $0x18] ss:$0 sm:$0xff] }
 0x113   :  { %v748_v2 = vmul.f32 %v2949_v58, %v735_v0  ;;  %v749_v5 = vmul.f32 %v2952_v59, %v731_v62  ;;  %v673_v40 = vpop.permute.xlu0 %672 }
 0x115   :  { %v722_v16 = vpop.permute.xlu1 %721  ;;  %1094 = vmatprep.subr.mxu0 %v749_v5 }
 0x116   :  { %v730_v19 = vsel %vm729_vm6, %v714_v17, %v722_v16  ;;  %v734_v10 = vsel %vm729_vm6, %v722_v16, %v714_v17  ;;  %1095 = vmatpush1.msra.mxu0 %v748_v2 }
 0x117   :  { %v746_v26 = vmul.f32 %v2949_v58, %v734_v10  ;;  %v747_v27 = vmul.f32 %v2952_v59, %v730_v19  ;;  %v671_v49 = vpop.permute.xlu0 %670 }
 0x119   :  { %v681_v29 = vpop.permute.xlu1 %680  ;;  %1096 = vmatprep.subr.mxu0 %v747_v27 }
 0x11a   :  { %v690_v12 = vsel %vm688_vm7, %v673_v40, %v681_v29  ;;  %v694_v14 = vsel %vm688_vm7, %v681_v29, %v673_v40  ;;  %1097 = vmatpush1.msra.mxu0 %v746_v26  ;;  %v3016_v26 = vld [vmem:[%s3752_s2] sm:$0xff]  ;;  %v3029_v40 = vld [vmem:[%s3752_s2 + $0x10] sm:$0xff] }
 0x11b   :  { %v707_v44 = vmul.f32 %v2968_v22, %v694_v14  ;;  %v708_v45 = vmul.f32 %v2971_v23, %v690_v12  ;;  %v962_v1 = vpop.permute.xlu0 %961 }
 0x11d   :  { %v679_v48 = vpop.permute.xlu1 %678  ;;  %1098 = vmatprep.subr.mxu0 %v708_v45 }
 0x11e   :  { %v689_v51 = vsel %vm688_vm7, %v671_v49, %v679_v48  ;;  %v693_v52 = vsel %vm688_vm7, %v679_v48, %v671_v49  ;;  %1099 = vmatpush1.msra.mxu0 %v707_v44  ;;  %v380_v48 = vld [vmem:[%s3750_s5 + $0x58] sm:$0xff]  ;;  %v379_v49 = vld [vmem:[%s3750_s5 + $0x50] sm:$0xff] }
 0x11f   :  { %v705_v57 = vmul.f32 %v2968_v22, %v693_v52  ;;  %v960_v16 = vpop.permute.xlu0 %959 }
 0x121   :  { %v970_v0 = vpop.permute.xlu1 %969 }
 0x122   :  { %v981_v2 = vsel %vm975_vm8, %v970_v0, %v962_v1 }
 0x1af   :  { %v2334_v6 = vpop.f32.mrf.mxu1 }
 0x1b0   :  { %v267_v11 = vadd.f32 %v2334_v6, %v2819_v4  ;;  %v995_v6 = vmul.f32 %v2999_v61, %v981_v2 }
 0x1b1   :  { %v261_v18 = vpop.f32.mrf.mxu1 }
 0x1b2   :  { %v2229_v24 = vmul.f32 -1.442695, %v267_v11  ;;  %v262_v25 = vadd.f32 %v261_v18, %v2817_v3  ;;  %v968_v11 = vpop.permute.xlu1 %967 }
 0x1b3   :  { %v976_v17 = vsel %vm975_vm8, %v960_v16, %v968_v11  ;;  %v980_v18 = vsel %vm975_vm8, %v968_v11, %v960_v16 }
 0x1b4   :  { %v2228_v28 = vmul.f32 -1.442695, %v262_v25  ;;  %2380 = vpow2.f32 %v2229_v24  ;;  %v992_v10 = vmul.f32 %v2994_v60, %v976_v17  ;;  %v993_v24 = vmul.f32 %v2999_v61, %v980_v18 }
 0x1b6   :  { %2382 = vpow2.f32 %v2228_v28  ;;  %v3021_v28 = vld [vmem:[%s3752_s2 + $0x18] sm:$0xff] }
 0x1b7   :  { %v2341_v46 = vpop.f32.mrf.mxu1 }
 0x1b8   :  { %v354_v47 = vadd.f32 %v2341_v46, %v2819_v4  ;;  %v706_v4 = vmul.f32 %v2971_v23, %v689_v51  ;;  %v383_v46 = vld [vmem:[%s3750_s5 + $0x70] sm:$0xff] }
 0x1b9   :  { %v348_v50 = vpop.f32.mrf.mxu1  ;;  %v375_v51 = vld [vmem:[%s3750_s5 + $0x30] sm:$0xff] }
 0x1ba   :  { %v2233_v53 = vmul.f32 -1.442695, %v354_v47  ;;  %v349_v56 = vadd.f32 %v348_v50, %v2817_v3  ;;  %1100 = vmatprep.subr.mxu0 %v706_v4  ;;  %v977_v3 = vsel %vm975_vm8, %v962_v1, %v970_v0  ;;  %v376_v50 = vld [vmem:[%s3750_s5 + $0x38] sm:$0xff] }
 0x1bb   :  { %1101 = vmatpush1.msra.mxu0 %v705_v57  ;;  %v994_v5 = vmul.f32 %v2994_v60, %v977_v3 }
 0x1bc   :  { %v2232_v62 = vmul.f32 -1.442695, %v349_v56  ;;  %2384 = vpow2.f32 %v2233_v53  ;;  %1130 = vmatprep.subr.mxu0 %v995_v6  ;;  %v372_v53 = vld [vmem:[%s3750_s5 + $0x18] sm:$0xff]  ;;  %v371_v56 = vld [vmem:[%s3750_s5 + $0x10] sm:$0xff] }
 0x1bd   :  { %1131 = vmatpush2.msra.mxu0 %v994_v5 }
 0x1be   :  { %2386 = vpow2.f32 %v2232_v62  ;;  %1132 = vmatprep.subr.mxu0 %v993_v24  ;;  %v2508_v62 = vmov 2  }
 0x1bf   :  { %1133 = vmatpush2.msra.mxu0 %v992_v10  ;;  %2373 = vset.pattern.permute.xlu1 %v2508_v62  ;;  %v2509_v62 = vmov 3  }
 0x1c0   :  { %1135 = vmatmul.mubr.f32.vlgmr.msra.gmra.mxu0 %v3016_v26 }
 0x1c1   :  { %v2381_v19 = vpop.eup %2380  ;;  %2245 = vmatprep.mubr.msk.f32.mxu0 %vm188_vm0, %v3021_v28 }
 0x1c2   :  { %v277_v29 = vadd.f32 1.0, %v2381_v19 }
 0x1c3   :  { %v2383_v25 = vpop.eup %2382 }
 0x1c4   :  { %v276_v27 = vadd.f32 1.0, %v2383_v25  ;;  %1141 = vmatmul.mubr.f32.gmra.mxu0 %v3029_v40 }
 0x1c6   :  { %2388 = vrcp.f32 %v276_v27 }
 0x1c7   :  { %2390 = vrcp.f32 %v277_v29 }
 0x1c9   :  { %v2385_v12 = vpop.eup %2384 }
 0x1ca   :  { %v364_v45 = vadd.f32 1.0, %v2385_v12 }
 0x1cb   :  { %v2387_v14 = vpop.eup %2386 }
 0x1cc   :  { %v363_v44 = vadd.f32 1.0, %v2387_v14 }
 0x1ce   :  { %2392 = vrcp.f32 %v363_v44 }
 0x1cf   :  { %2394 = vrcp.f32 %v364_v45 }
 0x1d3   :  { %v2389_v47 = vpop.eup %2388 }
 0x1d4   :  { %2234 = vmatmul.mubr.msk.f32.vlgmr.msra.gmra.mxu1 %vm385_vm9, %v2389_v47  ;;  %v2391_v52 = vpop.eup %2390 }
 0x1d5   :  { %512 = vmatpush1.msra.mxu1 %v383_v46  ;;  %468 = vmatprep.mubr.f32.mxu1 %v3767_v63 }
 0x1d6   :  { %513 = vmatprep.subr.mxu1 %v380_v48 }
 0x1d7   :  { %514 = vmatpush1.msra.mxu1 %v379_v49 }
 0x1d8   :  { %2235 = vmatmul.mubr.msk.f32.gmra.mxu1 %vm385_vm9, %v2391_v52  ;;  %515 = vmatprep.subr.mxu1 %v376_v50 }
 0x1d9   :  { %474 = vmatprep.mubr.f32.mxu1 %v3767_v63  ;;  %516 = vmatpush1.msra.mxu1 %v375_v51 }
 0x1da   :  { %517 = vmatprep.subr.mxu1 %v372_v53 }
 0x1db   :  { %v2393_v57 = vpop.eup %2392  ;;  %518 = vmatpush1.msra.mxu1 %v371_v56 }
 0x1dc   :  { %2236 = vmatmul.mubr.msk.f32.gmra.mxu1 %vm385_vm9, %v2393_v57  ;;  %v2395_v4 = vpop.eup %2394 }
 0x1dd   :  { %480 = vmatprep.mubr.f32.mxu1 %v3767_v63 }
 0x1e0   :  { %2237 = vmatmul.mubr.msk.f32.gmra.mxu1 %vm385_vm9, %v2395_v4 }
 0x1e1   :  { %551 = vmatprep.mubr.f32.mxu1 %v3767_v63 }
 0x1e4   :  { %2238 = vmatmul.mubr.msk.f32.vlgmr.msra.gmra.mxu1 %vm385_vm9, %v2389_v47 }
 0x1e5   :  { %557 = vmatprep.mubr.f32.mxu1 %v3767_v63 }
 0x1e8   :  { %2239 = vmatmul.mubr.msk.f32.gmra.mxu1 %vm385_vm9, %v2391_v52 }
 0x1e9   :  { %563 = vmatprep.mubr.f32.mxu1 %v3767_v63 }
 0x1ec   :  { %2240 = vmatmul.mubr.msk.f32.gmra.mxu1 %vm385_vm9, %v2393_v57 }
 0x1ed   :  { %569 = vmatprep.mubr.f32.mxu1 %v3767_v63 }
 0x1f0   :  { %2241 = vmatmul.mubr.msk.f32.gmra.mxu1 %vm385_vm9, %v2395_v4 }
 0x1f1   :  { %1350 = vmatprep.mubr.f32.mxu1 %v3767_v63 }
 0x294   :  { %v464_v0 = vpop.f32.mrf.mxu1 }
 0x295   :  { %v576_v18 = vmul.f32 %v464_v0, %v2666_v33  ;;  %v3111_v0 = vpop.permute.xlu1 %1041 }
 0x296   :  { %v466_v1 = vpop.f32.mrf.mxu1  ;;  %3778 = vst [vmem:[#allocation6_spill] sm:$0xff] %v3111_v0 }
 0x297   :  { %v577_v19 = vmul.f32 %v466_v1, %v2603_v13 }
 0x298   :  { %v470_v3 = vpop.f32.mrf.mxu1 }
 0x299   :  { %v578_v29 = vmul.f32 %v470_v3, %v2678_v35 }
 0x29a   :  { %v472_v2 = vpop.f32.mrf.mxu1 }
 0x29b   :  { %v579_v12 = vmul.f32 %v472_v2, %v2671_v34 }
 0x29c   :  { %v476_v5 = vpop.f32.mrf.mxu1 }
 0x29d   :  { %v580_v33 = vmul.f32 %v476_v5, %v2690_v37 }
 0x29e   :  { %v478_v6 = vpop.f32.mrf.mxu1 }
 0x29f   :  { %v581_v35 = vmul.f32 %v478_v6, %v2683_v36 }
 0x2a0   :  { %v482_v11 = vpop.f32.mrf.mxu1 }
 0x2a1   :  { %v582_v52 = vmul.f32 %v482_v11, %v2699_v39  ;;  %v1136_v39 = vpop.f32.mrf.mxu0 }
 0x2a2   :  { %v3069_v16 = vpop.f32.mrf.mxu1  ;;  %v3117_v2 = vadd.f32 %v1136_v39, %v3111_v0 }
 0x2a3   :  { %v1138_v1 = vpop.f32.mrf.mxu0 }
 0x2a4   :  { %v553_v17 = vpop.f32.mrf.mxu1  ;;  %v3114_v3 = vadd.f32 %v1138_v1, %v3111_v0 }
 0x2a5   :  { %v3073_v24 = vmul.f32 %v576_v18, %v553_v17 }
 0x2a6   :  { %v555_v10 = vpop.f32.mrf.mxu1  ;;  %v1167_v5 = vadd.f32 %v3114_v3, %v3117_v2 }
 0x2a7   :  { %3774 = vst [vmem:[#allocation2_spill] sm:$0xff] %v3073_v24  ;;  %v3075_v25 = vmul.f32 %v577_v19, %v555_v10  ;;  %v604_v47 = vmul.f32 %v3073_v24, %v3073_v24 }
 0x2a8   :  { %v559_v27 = vpop.f32.mrf.mxu1 }
 0x2a9   :  { %3775 = vst [vmem:[#allocation3_spill] sm:$0xff] %v3075_v25  ;;  %v592_v14 = vadd.f32 %v3075_v25, %v3073_v24  ;;  %v605_v44 = vmul.f32 %v3075_v25, %v3075_v25  ;;  %v3084_v13 = vmul.f32 %v578_v29, %v559_v27 }
 0x2aa   :  { %v561_v45 = vpop.f32.mrf.mxu1 }
 0x2ab   :  { %3776 = vst [vmem:[#allocation4_spill] sm:$0xff] %v3084_v13  ;;  %v3086_v46 = vmul.f32 %v579_v12, %v561_v45  ;;  %593 = vadd.xlane.f32.xlu0 %v592_v14  ;;  %v612_v49 = vadd.f32 %v605_v44, %v604_v47  ;;  %v606_v36 = vmul.f32 %v3084_v13, %v3084_v13  ;;  %v1142_v44 = vpop.f32.mrf.mxu0 }
 0x2ac   :  { %v565_v34 = vpop.f32.mrf.mxu1 }
 0x2ad   :  { %3777 = vst [vmem:[#allocation5_spill] sm:$0xff] %v3086_v46  ;;  %v3091_v48 = vmul.f32 %v580_v33, %v565_v34  ;;  %v595_v50 = vadd.f32 %v3086_v46, %v3084_v13  ;;  %v607_v37 = vmul.f32 %v3086_v46, %v3086_v46 }
 0x2ae   :  { %v567_v51 = vpop.f32.mrf.mxu1 }
 0x2af   :  { %v3098_v53 = vmul.f32 %v581_v35, %v567_v51  ;;  %613 = vadd.xlane.f32.xlu0 %v612_v49  ;;  %596 = vadd.xlane.f32.xlu1 %v595_v50  ;;  %v615_v4 = vadd.f32 %v607_v37, %v606_v36  ;;  %v1144_v35 = vpop.f32.mrf.mxu0 }
 0x2b0   :  { %v571_v56 = vpop.f32.mrf.mxu1 }
 0x2b1   :  { %v3102_v57 = vmul.f32 %v582_v52, %v571_v56 }
 0x2b3   :  { %616 = vadd.xlane.f32.xlu0 %v615_v4 }
 0x2c0   :  { %1009 = vperm.xlu1 %2373, %v2710_v42  }
 0x2c4   :  { %1013 = vperm.xlu1 %2373, %v2718_v43  }
 0x2c8   :  { %2374 = vset.pattern.permute.xlu1 %v2509_v62 }
 0x2c9   :  { %1045 = vperm.xlu0 %2372, %v2718_v43   ;;  %1021 = vperm.xlu1 %2374, %v2710_v42  }
 0x2cd   :  { %1025 = vperm.xlu1 %2374, %v2718_v43   ;;  %2376 = vset.pattern.permute.xlu0 %v3756_v41 }
 0x2d1   :  { %2375 = vset.pattern.permute.xlu1 %v3758_v8 }
 0x2f1   :  { %1168 = vadd.xlane.f32.xlu1 %v1167_v5 }
 0x334   :  { %v3121_v42 = vpop.xlane.xlu0 %593 }
 0x335   :  { %3779 = vst [vmem:[#allocation7_spill] sm:$0xff] %v3121_v42  ;;  %v624_v43 = vmul.f32 0.00390625, %v3121_v42 }
 0x337   :  { %v632_v17 = vmul.f32 %v624_v43, %v624_v43  ;;  %v1000_v56 = vsub.f32 %v3073_v24, %v624_v43  ;;  %v1001_v4 = vsub.f32 %v3075_v25, %v624_v43 }
 0x338   :  { %v3124_v6 = vpop.xlane.xlu0 %613  ;;  %v3126_v11 = vpop.xlane.xlu1 %596 }
 0x339   :  { %3780 = vst [vmem:[#allocation8_spill] sm:$0xff] %v3124_v6  ;;  %v628_v18 = vmul.f32 0.00390625, %v3124_v6  ;;  %v625_v19 = vmul.f32 0.00390625, %v3126_v11 }
 0x33b   :  { %v636_v10 = vsub.f32 %v628_v18, %v632_v17  ;;  %v633_v14 = vmul.f32 %v625_v19, %v625_v19  ;;  %v1002_v17 = vsub.f32 %v3084_v13, %v625_v19  ;;  %v1003_v18 = vsub.f32 %v3086_v46, %v625_v19 }
 0x33c   :  { %v3130_v27 = vpop.xlane.xlu0 %616  ;;  %v3135_v50 = vpop.permute.xlu1 %1009 }
 0x33d   :  { %3781 = vst [vmem:[#allocation9_spill] sm:$0xff] %v3130_v27  ;;  %v640_v29 = vmax.f32 %v636_v10, 0.0  ;;  %v629_v12 = vmul.f32 0.00390625, %v3130_v27 }
 0x33f   :  { %v644_v45 = vadd.f32 1e-05, %v640_v29  ;;  %v637_v33 = vsub.f32 %v629_v12, %v633_v14 }
 0x340   :  { %v3145_v36 = vpop.permute.xlu1 %1013 }
 0x341   :  { %2396 = vrsqrt.f32 %v644_v45  ;;  %v641_v47 = vmax.f32 %v637_v33, 0.0 }
 0x343   :  { %v645_v34 = vadd.f32 1e-05, %v641_v47 }
 0x344   :  { %v3133_v49 = vpop.permute.xlu0 %1045  ;;  %v3149_v5 = vpop.permute.xlu1 %1021 }
 0x345   :  { %3782 = vst [vmem:[#allocation10_spill] sm:$0xff] %v3133_v49  ;;  %2398 = vrsqrt.f32 %v645_v34  ;;  %v3138_v37 = vadd.f32 %v1142_v44, %v3133_v49  ;;  %v3141_v51 = vadd.f32 %v1144_v35, %v3133_v49 }
 0x347   :  { %v1170_v52 = vadd.f32 %v3141_v51, %v3138_v37 }
 0x348   :  { %v3162_v34 = vpop.permute.xlu1 %1025 }
 0x349   :  { %1171 = vadd.xlane.f32.xlu0 %v1170_v52 }
 0x34e   :  { %v2397_v62 = vpop.eup %2396 }
 0x34f   :  { %v1004_v39 = vmul.f32 %v2397_v62, %v1000_v56  ;;  %v1005_v1 = vmul.f32 %v2397_v62, %v1001_v4  ;;  %v3169_v4 = vld [vmem:[%s3752_s2 + $0x28] sm:$0xff]  ;;  %v3174_v62 = vld [vmem:[%s3752_s2 + $0x20] sm:$0xff] }
 0x350   :  { %2246 = vmatprep.mubr.msk.f32.mxu0 %vm188_vm0, %v3169_v4 }
 0x351   :  { %v1016_v10 = vmul.f32 %v3135_v50, %v1004_v39  ;;  %v1017_v29 = vmul.f32 %v3135_v50, %v1005_v1  ;;  %v3179_v39 = vld [vmem:[%s3752_s2 + $0x38] sm:$0xff]  ;;  %1147 = vmatmul.mubr.f32.gmra.mxu0 %v3174_v62  ;;  %v3189_v1 = vld [vmem:[%s3752_s2 + $0x30] sm:$0xff] }
 0x352   :  { %v2399_v12 = vpop.eup %2398  ;;  %2247 = vmatprep.mubr.msk.f32.mxu0 %vm188_vm0, %v3179_v39 }
 0x353   :  { %v3156_v14 = vadd.f32 %v3149_v5, %v1016_v10  ;;  %v1029_v44 = vadd.f32 %v3149_v5, %v1017_v29  ;;  %v1006_v43 = vmul.f32 %v2399_v12, %v1002_v17  ;;  %v1007_v45 = vmul.f32 %v2399_v12, %v1003_v18 }
 0x355   :  { %v1159_v33 = vadd.f32 %v1029_v44, %v3156_v14  ;;  %v1018_v47 = vmul.f32 %v3145_v36, %v1006_v43  ;;  %v1019_v35 = vmul.f32 %v3145_v36, %v1007_v45  ;;  %1153 = vmatmul.mubr.f32.gmra.mxu0 %v3189_v1 }
 0x356   :  { %1279 = vmatprep.mubr.f32.mxu0 %v3767_v63 }
 0x357   :  { %1160 = vadd.xlane.f32.xlu1 %v1159_v33  ;;  %v1030_v19 = vadd.f32 %v3162_v34, %v1018_v47  ;;  %v1031_v52 = vadd.f32 %v3162_v34, %v1019_v35 }
 0x359   :  { %v1162_v56 = vadd.f32 %v1031_v52, %v1030_v19 }
 0x35b   :  { %1163 = vadd.xlane.f32.xlu1 %v1162_v56 }
 0x37a   :  { %v1169_v17 = vpop.xlane.xlu1 %1168 }
 0x37b   :  { %v1173_v10 = vmul.f32 0.00390625, %v1169_v17 }
 0x3d2   :  { %v1172_v18 = vpop.xlane.xlu0 %1171 }
 0x3d3   :  { %v1174_v29 = vmul.f32 0.00390625, %v1172_v18 }
 0x3d5   :  { %v1188_v12 = vmax.f32 %v1173_v10, %v1174_v29 }
 0x3d7   :  { %v1189_v43 = vrot.slane %v1188_v12, 4 }
 0x3d9   :  { %v1190_v45 = vmax.f32 %v1188_v12, %v1189_v43 }
 0x3db   :  { %v1191_v33 = vrot.slane %v1190_v45, 2 }
 0x3dd   :  { %v1192_v47 = vmax.f32 %v1190_v45, %v1191_v33 }
 0x3df   :  { %v1193_v35 = vrot.slane %v1192_v47, 1 }
 0x3e0   :  { %v1161_v56 = vpop.xlane.xlu1 %1160 }
 0x3e1   :  { %v1194_v41 = vmax.f32 %v1192_v47, %v1193_v35  ;;  %v1165_v49 = vmul.f32 0.00390625, %v1161_v56  ;;  %v3224_v35 = vld [vmem:[%s3747_s0 + $0x28] sm:$0xff]  ;;  %v3231_v56 = vld [vmem:[%s3747_s0 + $0x30] sm:$0xff] }
 0x3e3   :  { %v1195_v8 = vsub.f32 %v1173_v10, %v1194_v41  ;;  %v1196_v25 = vsub.f32 %v1174_v29, %v1194_v41 }
 0x3e4   :  { %v1164_v24 = vpop.xlane.xlu1 %1163 }
 0x3e5   :  { %v1197_v46 = vmul.f32 1.442695, %v1195_v8  ;;  %v1199_v13 = vmul.f32 1.442695, %v1196_v25  ;;  %v1166_v0 = vmul.f32 0.00390625, %v1164_v24 }
 0x3e7   :  { %2400 = vpow2.f32 %v1197_v46  ;;  %v1175_v63 = vmax.f32 %v1165_v49, %v1166_v0 }
 0x3e8   :  { %2402 = vpow2.f32 %v1199_v13  ;;  %v3784_v13 = vmov 0.0  }
 0x3e9   :  { %v1176_v17 = vrot.slane %v1175_v63, 4 }
 0x3eb   :  { %v1177_v18 = vmax.f32 %v1175_v63, %v1176_v17  ;;  %v3197_v63 = vld [vmem:[%s3753_s6] sm:$0xff]  ;;  %v3785_v17 = vmov 0  }
 0x3ec   :  { %3783 = vst [vmem:[#allocation11_spill] sm:$0xff] %v3197_v63 }
 0x3ed   :  { %v1178_v6 = vrot.slane %v1177_v18, 2 }
 0x3ef   :  { %v1179_v27 = vmax.f32 %v1177_v18, %v1178_v6  ;;  %v3239_v18 = vld [vmem:[%s3747_s0 + $0x38] sm:$0xff] }
 0x3f1   :  { %v1180_v12 = vrot.slane %v1179_v27, 1 }
 0x3f3   :  { %v1181_v43 = vmax.f32 %v1179_v27, %v1180_v12  ;;  %v3250_v12 = vld [vmem:[%s3747_s0 + $0x20] sm:$0xff] }
 0x3f4   :  { %v2401_v45 = vpop.eup %2400 }
 0x3f5   :  { %v2403_v33 = vpop.eup %2402  ;;  %v1182_v42 = vsub.f32 %v1165_v49, %v1181_v43  ;;  %v1183_v47 = vsub.f32 %v1166_v0, %v1181_v43  ;;  %v1206_v25 = vmul.f32 %v2401_v45, %v1029_v44  ;;  %v1205_v24 = vmul.f32 %v2401_v45, %v3156_v14 }
 0x3f6   :  { %v1208_v10 = vmul.f32 %v2403_v33, %v1031_v52  ;;  %v1207_v41 = vmul.f32 %v2403_v33, %v1030_v19  ;;  %v583_v43 = vmul.f32 %v3239_v18, %v3069_v16 }
 0x3f7   :  { %v1184_v29 = vmul.f32 1.442695, %v1182_v42  ;;  %v1186_v8 = vmul.f32 1.442695, %v1183_v47  ;;  %v609_v47 = vmul.f32 %v3098_v53, %v3098_v53 }
 0x3f8   :  { %1314 = vmatprep.subr.mxu1 %v1208_v10  ;;  %v608_v10 = vmul.f32 %v3091_v48, %v3091_v48 }
 0x3f9   :  { %2404 = vpow2.f32 %v1184_v29  ;;  %1315 = vmatpush1.msra.mxu1 %v1207_v41 }
 0x3fa   :  { %2406 = vpow2.f32 %v1186_v8  ;;  %1316 = vmatprep.subr.mxu1 %v1206_v25  ;;  %v618_v41 = vadd.f32 %v609_v47, %v608_v10  ;;  %v598_v25 = vadd.f32 %v3098_v53, %v3091_v48 }
 0x3fb   :  { %1317 = vmatpush1.msra.mxu1 %v1205_v24 }
 0x3fc   :  { %2249 = vmatmul.mubr.msk.f32.vlgmr.msra.gmra.mxu1 %vm188_vm0, %v3197_v63  ;;  %2342 = vmatprep.subr.mxu1 %v3784_v13 }
 0x3fd   :  { %2346 = vmatprep.mubr.msk.f32.mxu1 %vm2510_vm10, %v3784_v13 }
 0x406   :  { %v2405_v46 = vpop.eup %2404 }
 0x407   :  { %v2407_v0 = vpop.eup %2406  ;;  %v1210_v49 = vsel %vm1209_vm11, %v2405_v46, %v2401_v45  ;;  %v1202_v14 = vmul.f32 %v2405_v46, %v3114_v3  ;;  %v1201_v44 = vmul.f32 %v2405_v46, %v3117_v2  ;;  %v610_v46 = vmul.f32 %v3102_v57, %v3102_v57 }
 0x408   :  { %v1211_v42 = vsel %vm1209_vm11, %v2407_v0, %v2403_v33  ;;  %v1204_v6 = vmul.f32 %v2407_v0, %v3141_v51  ;;  %v1203_v27 = vmul.f32 %v2407_v0, %v3138_v37  ;;  %v573_v37 = vpop.f32.mrf.mxu1 }
 0x409   :  { %2343 = vmatpush3.msra.mxu1 %v1211_v42  ;;  %v3308_v45 = vmul.f32 %v583_v43, %v573_v37 }
 0x40a   :  { %1243 = vmatprep.subr.mxu0 %v1204_v6  ;;  %2344 = vmatprep.subr.mxu1 %v3784_v13 }
 0x40b   :  { %1244 = vmatpush1.msra.mxu0 %v1203_v27  ;;  %2345 = vmatpush3.msra.mxu1 %v1210_v49  ;;  %v601_v33 = vadd.f32 %v3308_v45, %v3102_v57  ;;  %v611_v24 = vmul.f32 %v3308_v45, %v3308_v45 }
 0x40c   :  { %1245 = vmatprep.subr.mxu0 %v1202_v14  ;;  %2347 = vmatmul.mubr.msk.f32.vlgmr.msra.gmra.mxu1 %vm188_vm0, %v3197_v63 }
 0x40d   :  { %1246 = vmatpush1.msra.mxu0 %v1201_v44  ;;  %1619 = vmatprep.mubr.f32.mxu1 %v3784_v13  ;;  %v621_v42 = vadd.f32 %v611_v24, %v610_v46 }
 0x40e   :  { %2248 = vmatmul.mubr.msk.f32.vlgmr.msra.gmra.mxu0 %vm188_vm0, %v3197_v63 }
 0x40f   :  { %1869 = vmatprep.mubr.f32.mxu0 %v3784_v13 }
 0x411   :  { %v3316_v29 = vpop.f32.mrf.mxu0 }
 0x412   :  { %3786 = vst [vmem:[#allocation12_spill] sm:$0xff] %v3316_v29 }
 0x413   :  { %v3318_v16 = vpop.f32.mrf.mxu0 }
 0x414   :  { %3787 = vst [vmem:[#allocation13_spill] sm:$0xff] %v3318_v16 }
 0x415   :  { %v3320_v8 = vpop.f32.mrf.mxu0 }
 0x416   :  { %3788 = vst [vmem:[#allocation14_spill] sm:$0xff] %v3320_v8 }
 0x417   :  { %v3328_v0 = vpop.f32.mrf.mxu0 }
 0x418   :  { %3789 = vst [vmem:[#allocation15_spill] sm:$0xff] %v3328_v0 }
 0x4bc   :  { %v3217_v51 = vpop.f32.mrf.mxu1 }
 0x4be   :  { %v3219_v3 = vpop.f32.mrf.mxu1 }
 0x4cc   :  { %v1423_v19 = vpop.f32.mrf.mxu1 }
 0x4cd   :  { %2408 = vrcp.f32 %v1423_v19 }
 0x4ce   :  { %v2348_v2 = vpop.f32.mrf.mxu1  ;;  %v1281_v6 = vpop.f32.mrf.mxu0 }
 0x4d0   :  { %v1283_v27 = vpop.f32.mrf.mxu0 }
 0x4da   :  { %v2409_v52 = vpop.eup %2408 }
 0x4db   :  { %1436 = vperm.xlu0 %2376, %v2409_v52   ;;  %1430 = vperm.xlu1 %2375, %v2409_v52  }
 0x4df   :  { %889 = vrot.lane.b32.xlu0 %v3224_v35, %s2499_s11  ;;  %924 = vrot.lane.b32.xlu1 %v3231_v56, %s2498_s29 }
 0x4e0   :  { %2377 = vset.pattern.permute.xlu0 %v3785_v17 }
 0x4e3   :  { %850 = vrot.lane.b32.xlu0 %v3239_v18, %s2500_s12  ;;  %932 = vrot.lane.b32.xlu1 %v3239_v18, %s2498_s29 }
 0x4e7   :  { %848 = vrot.lane.b32.xlu0 %v3224_v35, %s2500_s12  ;;  %922 = vrot.lane.b32.xlu1 %v3250_v12, %s2498_s29 }
 0x4eb   :  { %809 = vrot.lane.b32.xlu0 %v3239_v18, %s2501_s13  ;;  %930 = vrot.lane.b32.xlu1 %v3224_v35, %s2498_s29 }
 0x4ef   :  { %807 = vrot.lane.b32.xlu0 %v3224_v35, %s2501_s13  ;;  %883 = vrot.lane.b32.xlu1 %v3231_v56, %s2499_s11 }
 0x4f3   :  { %768 = vrot.lane.b32.xlu0 %v3239_v18, %s2502_s16  ;;  %891 = vrot.lane.b32.xlu1 %v3239_v18, %s2499_s11 }
 0x4f7   :  { %766 = vrot.lane.b32.xlu0 %v3224_v35, %s2502_s16  ;;  %881 = vrot.lane.b32.xlu1 %v3250_v12, %s2499_s11 }
 0x4fb   :  { %727 = vrot.lane.b32.xlu0 %v3239_v18, %s2503_s1  ;;  %842 = vrot.lane.b32.xlu1 %v3231_v56, %s2500_s12 }
 0x4ff   :  { %725 = vrot.lane.b32.xlu0 %v3224_v35, %s2503_s1  ;;  %840 = vrot.lane.b32.xlu1 %v3250_v12, %s2500_s12 }
 0x503   :  { %684 = vrot.lane.b32.xlu0 %v3239_v18, %s2504_s17  ;;  %801 = vrot.lane.b32.xlu1 %v3231_v56, %s2501_s13 }
 0x507   :  { %682 = vrot.lane.b32.xlu0 %v3224_v35, %s2504_s17  ;;  %799 = vrot.lane.b32.xlu1 %v3250_v12, %s2501_s13 }
 0x50b   :  { %973 = vrot.lane.b32.xlu0 %v3239_v18, %s2505_s4  ;;  %760 = vrot.lane.b32.xlu1 %v3231_v56, %s2502_s16 }
 0x50f   :  { %971 = vrot.lane.b32.xlu0 %v3224_v35, %s2505_s4  ;;  %758 = vrot.lane.b32.xlu1 %v3250_v12, %s2502_s16 }
 0x513   :  { %719 = vrot.lane.b32.xlu1 %v3231_v56, %s2503_s1 }
 0x517   :  { %717 = vrot.lane.b32.xlu1 %v3250_v12, %s2503_s1 }
 0x51b   :  { %676 = vrot.lane.b32.xlu1 %v3231_v56, %s2504_s17 }
 0x51f   :  { %674 = vrot.lane.b32.xlu1 %v3250_v12, %s2504_s17 }
 0x523   :  { %965 = vrot.lane.b32.xlu1 %v3231_v56, %s2505_s4 }
 0x527   :  { %963 = vrot.lane.b32.xlu1 %v3250_v12, %s2505_s4 }
 0x52e   :  { %602 = vadd.xlane.f32.xlu0 %v601_v33 }
 0x532   :  { %619 = vadd.xlane.f32.xlu0 %v618_v41 }
 0x54b   :  { %599 = vadd.xlane.f32.xlu1 %v598_v25 }
 0x54f   :  { %622 = vadd.xlane.f32.xlu1 %v621_v42 }
 0x556   :  { %v1437_v49 = vpop.permute.xlu0 %1436  ;;  %v1431_v14 = vpop.permute.xlu1 %1430 }
 0x557   :  { %v1439_v44 = vmul.f32 %v1437_v49, %v3217_v51  ;;  %v1440_v37 = vmul.f32 %v1437_v49, %v3219_v3  ;;  %v1433_v19 = vmul.f32 %v1431_v14, %v1281_v6  ;;  %v1434_v2 = vmul.f32 %v1431_v14, %v1283_v27 }
 0x559   :  { %v1441_v52 = vadd.f32 %v1439_v44, %v1433_v19  ;;  %v1442_v17 = vadd.f32 %v1440_v37, %v1434_v2 }
 0x55a   :  { %v925_v43 = vpop.permute.xlu1 %924  ;;  %v890_v33 = vpop.permute.xlu0 %889 }
 0x55b   :  { %v2251_v47 = vmul.f32 -1.442695, %v1441_v52  ;;  %v2252_v10 = vmul.f32 -1.442695, %v1442_v17 }
 0x55d   :  { %2410 = vpow2.f32 %v2251_v47 }
 0x55e   :  { %2412 = vpow2.f32 %v2252_v10  ;;  %v933_v41 = vpop.permute.xlu1 %932  ;;  %v851_v25 = vpop.permute.xlu0 %850 }
 0x55f   :  { %v942_v2 = vsel %vm934_vm1, %v933_v41, %v925_v43  ;;  %v938_v17 = vsel %vm934_vm1, %v925_v43, %v933_v41 }
 0x560   :  { %v957_v43 = vmul.f32 %v2849_v20, %v938_v17 }
 0x562   :  { %v923_v24 = vpop.permute.xlu1 %922  ;;  %v849_v46 = vpop.permute.xlu0 %848 }
 0x566   :  { %v931_v42 = vpop.permute.xlu1 %930  ;;  %v3332_v51 = vpop.permute.xlu0 %809 }
 0x56a   :  { %v2411_v16 = vpop.eup %2410  ;;  %v884_v29 = vpop.permute.xlu1 %883 }
 0x56b   :  { %v2413_v3 = vpop.eup %2412  ;;  %v1449_v6 = vadd.f32 1.0, %v2411_v16  ;;  %v3334_v14 = vpop.permute.xlu0 %807  ;;  %v941_v16 = vsel %vm934_vm1, %v931_v42, %v923_v24 }
 0x56c   :  { %v1450_v27 = vadd.f32 1.0, %v2413_v3  ;;  %v3347_v3 = vld [vmem:[%s3754_s7] sm:$0xff]  ;;  %v956_v8 = vmul.f32 %v2852_v21, %v941_v16 }
 0x56d   :  { %2414 = vrcp.f32 %v1449_v6  ;;  %v958_v6 = vmul.f32 %v2852_v21, %v942_v2  ;;  %v3369_v21 = vld [vmem:[%s3754_s7 + $0x8] sm:$0xff] }
 0x56e   :  { %2416 = vrcp.f32 %v1450_v27  ;;  %v892_v49 = vpop.permute.xlu1 %891  ;;  %v937_v27 = vsel %vm934_vm1, %v923_v24, %v931_v42 }
 0x56f   :  { %v3336_v19 = vpop.permute.xlu0 %768  ;;  %v901_v41 = vsel %vm893_vm2, %v892_v49, %v884_v29  ;;  %v897_v63 = vsel %vm893_vm2, %v884_v29, %v892_v49  ;;  %v955_v24 = vmul.f32 %v2849_v20, %v937_v27 }
 0x570   :  { %v917_v29 = vmul.f32 %v2868_v32, %v901_v41 }
 0x572   :  { %v882_v44 = vpop.permute.xlu1 %881 }
 0x573   :  { %v3352_v0 = vpop.permute.xlu0 %766  ;;  %v900_v42 = vsel %vm893_vm2, %v890_v33, %v882_v44  ;;  %v896_v49 = vsel %vm893_vm2, %v882_v44, %v890_v33 }
 0x574   :  { %v915_v17 = vmul.f32 %v2868_v32, %v900_v42  ;;  %v914_v33 = vmul.f32 %v2865_v31, %v896_v49 }
 0x576   :  { %v843_v37 = vpop.permute.xlu1 %842 }
 0x577   :  { %v860_v20 = vsel %vm852_vm3, %v851_v25, %v843_v37 }
 0x578   :  { %v876_v32 = vmul.f32 %v2888_v55, %v860_v20 }
 0x57a   :  { %v2415_v52 = vpop.eup %2414  ;;  %v841_v47 = vpop.permute.xlu1 %840 }
 0x57b   :  { %v2417_v10 = vpop.eup %2416 }
 0x57c   :  { %1585 = vmatprep.subr.mxu1 %v2417_v10  ;;  %v856_v10 = vsel %vm852_vm3, %v843_v37, %v851_v25  ;;  %v855_v25 = vsel %vm852_vm3, %v841_v47, %v849_v46 }
 0x57d   :  { %1586 = vmatpush1.msra.mxu1 %v2415_v52  ;;  %v916_v52 = vmul.f32 %v2865_v31, %v897_v63  ;;  %v859_v63 = vsel %vm852_vm3, %v849_v46, %v841_v47  ;;  %v875_v44 = vmul.f32 %v2885_v54, %v856_v10  ;;  %v873_v27 = vmul.f32 %v2885_v54, %v855_v25 }
 0x57e   :  { %1664 = vmatprep.subr.mxu1 %v958_v6  ;;  %2255 = vmatmul.mubr.msk.f32.vlgmr.msra.gmra.mxu1 %vm1548_vm12, %v3347_v3  ;;  %v802_v2 = vpop.permute.xlu1 %801  ;;  %v728_v6 = vpop.permute.xlu0 %727  ;;  %v874_v31 = vmul.f32 %v2888_v55, %v859_v63 }
 0x57f   :  { %1665 = vmatpush1.msra.mxu1 %v957_v43  ;;  %1625 = vmatprep.mubr.f32.mxu1 %v3784_v13  ;;  %v815_v41 = vsel %vm811_vm4, %v802_v2, %v3332_v51  ;;  %v819_v46 = vsel %vm811_vm4, %v3332_v51, %v802_v2 }
 0x580   :  { %1666 = vmatprep.subr.mxu1 %v956_v8  ;;  %v2488_v8 = vld [vmem:[%s3752_s2 + $0x8] sm:$0xff]  ;;  %v835_v54 = vmul.f32 %v2905_v7, %v815_v41  ;;  %v834_v42 = vmul.f32 %v2908_v15, %v819_v46 }
 0x581   :  { %1667 = vmatpush1.msra.mxu1 %v955_v24 }
 0x582   :  { %1668 = vmatprep.subr.mxu1 %v917_v29  ;;  %v800_v16 = vpop.permute.xlu1 %799  ;;  %2256 = vmatmul.mubr.msk.f32.gmra.mxu1 %vm1548_vm12, %v3369_v21  ;;  %v726_v43 = vpop.permute.xlu0 %725 }
 0x583   :  { %1669 = vmatpush1.msra.mxu1 %v916_v52  ;;  %2257 = vmatprep.mubr.msk.f32.mxu1 %vm188_vm0, %v2488_v8  ;;  %v814_v55 = vsel %vm811_vm4, %v800_v16, %v3334_v14  ;;  %v818_v24 = vsel %vm811_vm4, %v3334_v14, %v800_v16 }
 0x584   :  { %1670 = vmatprep.subr.mxu1 %v915_v17  ;;  %v833_v51 = vmul.f32 %v2905_v7, %v814_v55  ;;  %v832_v14 = vmul.f32 %v2908_v15, %v818_v24 }
 0x585   :  { %1671 = vmatpush1.msra.mxu1 %v914_v33 }
 0x586   :  { %1672 = vmatprep.subr.mxu1 %v876_v32  ;;  %v761_v37 = vpop.permute.xlu1 %760  ;;  %v685_v29 = vpop.permute.xlu0 %684 }
 0x587   :  { %1673 = vmatpush1.msra.mxu1 %v875_v44 }
 0x588   :  { %1674 = vmatprep.subr.mxu1 %v874_v31 }
 0x589   :  { %1675 = vmatpush1.msra.mxu1 %v873_v27 }
 0x58a   :  { %1676 = vmatprep.subr.mxu1 %v3239_v18  ;;  %v759_v47 = vpop.permute.xlu1 %758  ;;  %v774_v18 = vsel %vm770_vm5, %v761_v37, %v3336_v19 }
 0x58b   :  { %1677 = vmatpush1.msra.mxu1 %v3231_v56  ;;  %v778_v56 = vsel %vm770_vm5, %v3336_v19, %v761_v37  ;;  %v794_v49 = vmul.f32 %v2932_v38, %v774_v18  ;;  %v777_v7 = vsel %vm770_vm5, %v3352_v0, %v759_v47 }
 0x58c   :  { %1678 = vmatprep.subr.mxu1 %v3224_v35  ;;  %v773_v35 = vsel %vm770_vm5, %v759_v47, %v3352_v0  ;;  %v791_v17 = vmul.f32 %v2929_v30, %v777_v7 }
 0x58d   :  { %1679 = vmatpush1.msra.mxu1 %v3250_v12  ;;  %v793_v12 = vmul.f32 %v2929_v30, %v778_v56  ;;  %v792_v15 = vmul.f32 %v2932_v38, %v773_v35  ;;  %v683_v38 = vpop.permute.xlu0 %682 }
 0x58e   :  { %1680 = vmatprep.subr.mxu1 %v835_v54  ;;  %v720_v2 = vpop.permute.xlu1 %719 }
 0x58f   :  { %1681 = vmatpush1.msra.mxu1 %v834_v42  ;;  %v733_v19 = vsel %vm729_vm6, %v720_v2, %v728_v6  ;;  %v737_v52 = vsel %vm729_vm6, %v728_v6, %v720_v2 }
 0x590   :  { %1682 = vmatprep.subr.mxu1 %v833_v51  ;;  %v753_v10 = vmul.f32 %v2952_v59, %v733_v19  ;;  %v752_v63 = vmul.f32 %v2949_v58, %v737_v52 }
 0x591   :  { %1683 = vmatpush1.msra.mxu1 %v832_v14  ;;  %v974_v31 = vpop.permute.xlu0 %973 }
 0x592   :  { %1684 = vmatprep.subr.mxu1 %v794_v49  ;;  %v718_v20 = vpop.permute.xlu1 %717 }
 0x593   :  { %1685 = vmatpush1.msra.mxu1 %v793_v12  ;;  %v732_v0 = vsel %vm729_vm6, %v718_v20, %v726_v43  ;;  %v736_v16 = vsel %vm729_vm6, %v726_v43, %v718_v20 }
 0x594   :  { %v751_v33 = vmul.f32 %v2952_v59, %v732_v0  ;;  %1686 = vmatprep.subr.mxu1 %v792_v15  ;;  %v750_v30 = vmul.f32 %v2949_v58, %v736_v16 }
 0x595   :  { %1687 = vmatpush1.msra.mxu1 %v791_v17  ;;  %v972_v24 = vpop.permute.xlu0 %971 }
 0x596   :  { %1688 = vmatprep.subr.mxu1 %v753_v10  ;;  %v677_v6 = vpop.permute.xlu1 %676 }
 0x597   :  { %1689 = vmatpush1.msra.mxu1 %v752_v63  ;;  %v692_v8 = vsel %vm688_vm7, %v677_v6, %v685_v29  ;;  %v696_v32 = vsel %vm688_vm7, %v685_v29, %v677_v6 }
 0x598   :  { %v711_v25 = vmul.f32 %v2968_v22, %v696_v32  ;;  %v712_v59 = vmul.f32 %v2971_v23, %v692_v8  ;;  %1690 = vmatprep.subr.mxu1 %v751_v33 }
 0x599   :  { %1691 = vmatpush1.msra.mxu1 %v750_v30 }
 0x59a   :  { %1692 = vmatprep.subr.mxu1 %v712_v59  ;;  %v675_v44 = vpop.permute.xlu1 %674 }
 0x59b   :  { %v691_v37 = vsel %vm688_vm7, %v675_v44, %v683_v38  ;;  %v695_v58 = vsel %vm688_vm7, %v683_v38, %v675_v44  ;;  %1693 = vmatpush1.msra.mxu1 %v711_v25  ;;  %v3790_v44 = vld [vmem:[#allocation7_spill] sm:$0xff] }
 0x59c   :  { %v709_v27 = vmul.f32 %v2968_v22, %v695_v58  ;;  %v710_v43 = vmul.f32 %v2971_v23, %v691_v37 }
 0x59e   :  { %1694 = vmatprep.subr.mxu1 %v710_v43  ;;  %v966_v41 = vpop.permute.xlu1 %965 }
 0x59f   :  { %v979_v46 = vsel %vm975_vm8, %v966_v41, %v974_v31  ;;  %v983_v47 = vsel %vm975_vm8, %v974_v31, %v966_v41  ;;  %1695 = vmatpush1.msra.mxu1 %v709_v27 }
 0x5a0   :  { %v998_v55 = vmul.f32 %v2994_v60, %v979_v46  ;;  %v999_v54 = vmul.f32 %v2999_v61, %v983_v47  ;;  %v3792_v46 = vld [vmem:[#allocation8_spill] sm:$0xff] }
 0x5a2   :  { %1724 = vmatprep.subr.mxu1 %v999_v54  ;;  %v964_v42 = vpop.permute.xlu1 %963 }
 0x5a3   :  { %v978_v22 = vsel %vm975_vm8, %v964_v42, %v972_v24  ;;  %v982_v23 = vsel %vm975_vm8, %v972_v24, %v964_v42  ;;  %1725 = vmatpush2.msra.mxu1 %v998_v55 }
 0x5a4   :  { %v996_v18 = vmul.f32 %v2994_v60, %v978_v22  ;;  %v997_v51 = vmul.f32 %v2999_v61, %v982_v23 }
 0x5a6   :  { %1726 = vmatprep.subr.mxu1 %v997_v51 }
 0x5a7   :  { %1727 = vmatpush2.msra.mxu1 %v996_v18 }
 0x5a8   :  { %1729 = vmatmul.mubr.f32.vlgmr.msra.gmra.mxu1 %v3016_v26 }
 0x5a9   :  { %2258 = vmatprep.mubr.msk.f32.mxu1 %vm188_vm0, %v3021_v28 }
 0x5ac   :  { %1735 = vmatmul.mubr.f32.gmra.mxu1 %v3029_v40 }
 0x5ad   :  { %2259 = vmatprep.mubr.msk.f32.mxu1 %vm188_vm0, %v3169_v4 }
 0x5b0   :  { %1741 = vmatmul.mubr.f32.gmra.mxu1 %v3174_v62 }
 0x5b1   :  { %2260 = vmatprep.mubr.msk.f32.mxu1 %vm188_vm0, %v3179_v39 }
 0x5b4   :  { %1747 = vmatmul.mubr.f32.gmra.mxu1 %v3189_v1 }
 0x5b7   :  { %v603_v9 = vpop.xlane.xlu0 %602 }
 0x5b8   :  { %v627_v26 = vmul.f32 0.00390625, %v603_v9 }
 0x5ba   :  { %v635_v35 = vmul.f32 %v627_v26, %v627_v26  ;;  %v1642_v20 = vsub.f32 %v3102_v57, %v627_v26  ;;  %v1643_v17 = vsub.f32 %v3308_v45, %v627_v26 }
 0x5bb   :  { %v620_v60 = vpop.xlane.xlu0 %619 }
 0x5bc   :  { %v630_v2 = vmul.f32 0.00390625, %v620_v60 }
 0x5d4   :  { %v600_v61 = vpop.xlane.xlu1 %599 }
 0x5d5   :  { %v626_v56 = vmul.f32 0.00390625, %v600_v61  ;;  %v652_v31 = vadd.f32 %v600_v61, %v3790_v44  ;;  %v3793_v61 = vld [vmem:[#allocation6_spill] sm:$0xff] }
 0x5d7   :  { %v634_v29 = vmul.f32 %v626_v56, %v626_v56  ;;  %v1640_v39 = vsub.f32 %v3091_v48, %v626_v56  ;;  %v1641_v1 = vsub.f32 %v3098_v53, %v626_v56  ;;  %v656_v43 = vmul.f32 0.001953125, %v652_v31 }
 0x5d8   :  { %v623_v28 = vpop.xlane.xlu1 %622 }
 0x5d9   :  { %v638_v14 = vsub.f32 %v630_v2, %v634_v29  ;;  %v631_v40 = vmul.f32 0.00390625, %v623_v28  ;;  %v660_v54 = vmul.f32 %v656_v43, %v656_v43 }
 0x5db   :  { %v642_v49 = vmax.f32 %v638_v14, 0.0  ;;  %v639_v4 = vsub.f32 %v631_v40, %v635_v35  ;;  %v3794_v40 = vld [vmem:[#allocation10_spill] sm:$0xff] }
 0x5dd   :  { %v646_v7 = vadd.f32 1e-05, %v642_v49  ;;  %v643_v62 = vmax.f32 %v639_v4, 0.0 }
 0x5df   :  { %2418 = vrsqrt.f32 %v646_v7  ;;  %v647_v12 = vadd.f32 1e-05, %v643_v62 }
 0x5e1   :  { %2420 = vrsqrt.f32 %v647_v12 }
 0x5ec   :  { %v2419_v19 = vpop.eup %2418 }
 0x5ed   :  { %v1644_v15 = vmul.f32 %v2419_v19, %v1640_v39  ;;  %v1645_v52 = vmul.f32 %v2419_v19, %v1641_v1  ;;  %v3795_v39 = vld [vmem:[#allocation4_spill] sm:$0xff]  ;;  %v3796_v19 = vld [vmem:[#allocation5_spill] sm:$0xff] }
 0x5ee   :  { %v2421_v0 = vpop.eup %2420 }
 0x5ef   :  { %v1648_v10 = vmul.f32 %v1644_v15, %v3135_v50  ;;  %v1649_v16 = vmul.f32 %v1645_v52, %v3135_v50  ;;  %v1646_v33 = vmul.f32 %v2421_v0, %v1642_v20  ;;  %v1647_v38 = vmul.f32 %v2421_v0, %v1643_v17  ;;  %v3797_v20 = vld [vmem:[#allocation2_spill] sm:$0xff]  ;;  %v3798_v0 = vld [vmem:[#allocation3_spill] sm:$0xff] }
 0x5f0   :  { %v1032_v17 = vsub.f32 %v3797_v20, %v656_v43 }
 0x5f1   :  { %v3484_v63 = vadd.f32 %v1648_v10, %v3149_v5  ;;  %v3487_v6 = vadd.f32 %v1649_v16, %v3149_v5  ;;  %v1650_v30 = vmul.f32 %v1646_v33, %v3145_v36  ;;  %v1651_v8 = vmul.f32 %v1647_v38, %v3145_v36  ;;  %v3791_v36 = vld [vmem:[#allocation9_spill] sm:$0xff] }
 0x5f2   :  { %v653_v5 = vadd.f32 %v603_v9, %v3126_v11  ;;  %v655_v58 = vadd.f32 %v623_v28, %v3791_v36  ;;  %v1033_v10 = vsub.f32 %v3798_v0, %v656_v43  ;;  %v43_v33 = vld [vmem:[%s3749_s3 + $0x18] sm:$0xff] }
 0x5f3   :  { %v1753_v32 = vadd.f32 %v3487_v6, %v3484_v63  ;;  %v3494_v25 = vadd.f32 %v1650_v30, %v3162_v34  ;;  %v3497_v50 = vadd.f32 %v1651_v8, %v3162_v34  ;;  %v654_v34 = vadd.f32 %v620_v60, %v3792_v46  ;;  %v42_v8 = vld [vmem:[%s3749_s3 + $0x10] sm:$0xff] }
 0x5f4   :  { %v657_v27 = vmul.f32 0.001953125, %v653_v5  ;;  %v659_v47 = vmul.f32 0.001953125, %v655_v58  ;;  %v1656_v46 = vsub.f32 %v3091_v48, %v656_v43 }
 0x5f5   :  { %1754 = vadd.xlane.f32.xlu0 %v1753_v32  ;;  %v1756_v59 = vadd.f32 %v3497_v50, %v3494_v25  ;;  %v658_v42 = vmul.f32 0.001953125, %v654_v34  ;;  %v1657_v34 = vsub.f32 %v3098_v53, %v656_v43  ;;  %v3799_v43 = vmov 1  }
 0x5f6   :  { %v661_v24 = vmul.f32 %v657_v27, %v657_v27  ;;  %v1034_v1 = vsub.f32 %v3795_v39, %v657_v27  ;;  %v1035_v15 = vsub.f32 %v3796_v19, %v657_v27  ;;  %v1658_v5 = vsub.f32 %v3102_v57, %v657_v27 }
 0x5f7   :  { %1757 = vadd.xlane.f32.xlu1 %v1756_v59  ;;  %v662_v23 = vsub.f32 %v658_v42, %v660_v54  ;;  %v1659_v44 = vsub.f32 %v3308_v45, %v657_v27 }
 0x5f8   :  { %v663_v22 = vsub.f32 %v659_v47, %v661_v24 }
 0x5f9   :  { %v664_v60 = vmax.f32 %v662_v23, 0.0 }
 0x5fa   :  { %v665_v51 = vmax.f32 %v663_v22, 0.0 }
 0x5fb   :  { %v666_v4 = vadd.f32 1e-05, %v664_v60 }
 0x5fc   :  { %v667_v28 = vadd.f32 1e-05, %v665_v51 }
 0x5fe   :  { %2422 = vrsqrt.f32 %v667_v28 }
 0x5ff   :  { %2424 = vrsqrt.f32 %v666_v4 }
 0x60b   :  { %v2423_v62 = vpop.eup %2422 }
 0x60c   :  { %v2425_v52 = vpop.eup %2424  ;;  %v3539_v32 = vmul.f32 %v2423_v62, %v1034_v1  ;;  %v3541_v59 = vmul.f32 %v2423_v62, %v1035_v15  ;;  %v3551_v47 = vmul.f32 %v2423_v62, %v1658_v5  ;;  %v3553_v54 = vmul.f32 %v2423_v62, %v1659_v44 }
 0x60d   :  { %v3545_v36 = vmul.f32 %v2425_v52, %v1032_v17  ;;  %v3547_v58 = vmul.f32 %v2425_v52, %v1033_v10  ;;  %v3559_v27 = vmul.f32 %v2425_v52, %v1656_v46  ;;  %v3561_v42 = vmul.f32 %v2425_v52, %v1657_v34 }
 0x60f   :  { %v1455_v57 = vadd.f32 %v3539_v32, %v3545_v36  ;;  %v1462_v45 = vadd.f32 %v3541_v59, %v3547_v58  ;;  %v2045_v48 = vadd.f32 %v3551_v47, %v3559_v27  ;;  %v2052_v53 = vadd.f32 %v3553_v54, %v3561_v42 }
 0x611   :  { %v1463_v51 = vrot.slane %v1462_v45, 4  ;;  %v2053_v60 = vrot.slane %v2052_v53, 4 }
 0x613   :  { %v1464_v28 = vadd.f32 %v1463_v51, %v1462_v45  ;;  %v2054_v4 = vadd.f32 %v2053_v60, %v2052_v53 }
 0x615   :  { %v1465_v39 = vrot.slane %v1464_v28, 2  ;;  %v2055_v17 = vrot.slane %v2054_v4, 2 }
 0x617   :  { %v1466_v20 = vadd.f32 %v1465_v39, %v1464_v28  ;;  %v3804_v39 = vld [vmem:[#allocation13_spill] sm:$0xff] }
 0x619   :  { %v1467_v10 = vrot.slane %v1466_v20, 1 }
 0x61b   :  { %v1468_v5 = vadd.f32 %v1467_v10, %v1466_v20 }
 0x63e   :  { %v3503_v37 = vpop.f32.mrf.mxu1 }
 0x640   :  { %v3506_v41 = vpop.f32.mrf.mxu1 }
 0x642   :  { %v3509_v55 = vpop.f32.mrf.mxu1 }
 0x644   :  { %v3511_v11 = vpop.f32.mrf.mxu1 }
 0x668   :  { %v1730_v18 = vpop.f32.mrf.mxu1 }
 0x669   :  { %v3514_v56 = vadd.f32 %v1730_v18, %v3793_v61  ;;  %v1456_v18 = vrot.slane %v1455_v57, 4 }
 0x66a   :  { %v1732_v9 = vpop.f32.mrf.mxu1 }
 0x66b   :  { %v3517_v26 = vadd.f32 %v1732_v9, %v3793_v61  ;;  %v2046_v61 = vrot.slane %v2045_v48, 4 }
 0x66c   :  { %v1736_v2 = vpop.f32.mrf.mxu1 }
 0x66d   :  { %v1761_v29 = vadd.f32 %v3517_v26, %v3514_v56  ;;  %v3522_v35 = vadd.f32 %v1736_v2, %v3794_v40 }
 0x66e   :  { %v1738_v14 = vpop.f32.mrf.mxu1 }
 0x66f   :  { %v3525_v49 = vadd.f32 %v1738_v14, %v3794_v40  ;;  %1762 = vadd.xlane.f32.xlu0 %v1761_v29  ;;  %v1457_v29 = vadd.f32 %v1456_v18, %v1455_v57  ;;  %v2047_v40 = vadd.f32 %v2046_v61, %v2045_v48 }
 0x671   :  { %v1764_v7 = vadd.f32 %v3525_v49, %v3522_v35  ;;  %v2048_v15 = vrot.slane %v2047_v40, 2 }
 0x673   :  { %1765 = vadd.xlane.f32.xlu1 %v1764_v7 }
 0x67e   :  { %v1755_v12 = vpop.xlane.xlu0 %1754 }
 0x67f   :  { %v1759_v38 = vmul.f32 0.00390625, %v1755_v12  ;;  %v1458_v12 = vrot.slane %v1457_v29, 2 }
 0x680   :  { %v1758_v16 = vpop.xlane.xlu1 %1757 }
 0x681   :  { %v1760_v30 = vmul.f32 0.00390625, %v1758_v16  ;;  %v1459_v52 = vadd.f32 %v1458_v12, %v1457_v29  ;;  %v2049_v16 = vadd.f32 %v2048_v15, %v2047_v40 }
 0x683   :  { %v1769_v31 = vmax.f32 %v1759_v38, %v1760_v30  ;;  %v1460_v0 = vrot.slane %v1459_v52, 1  ;;  %v2050_v44 = vrot.slane %v2049_v16, 1 }
 0x684   :  { %1055 = vperm.xlu1 %2375, %v43_v33   ;;  %v2056_v33 = vadd.f32 %v2055_v17, %v2054_v4  ;;  %v3802_v4 = vld [vmem:[#allocation15_spill] sm:$0xff] }
 0x685   :  { %1050 = vperm.xlu0 %2377, %v42_v8   ;;  %v1770_v24 = vrot.slane %v1769_v31, 4  ;;  %v1461_v8 = vadd.f32 %v1460_v0, %v1459_v52  ;;  %v2051_v46 = vadd.f32 %v2050_v44, %v2049_v16 }
 0x687   :  { %v1771_v22 = vmax.f32 %v1769_v31, %v1770_v24  ;;  %v2057_v31 = vrot.slane %v2056_v33, 1  ;;  %v3582_v53 = vmul.f32 0.0625, %v2051_v46 }
 0x689   :  { %2379 = vset.pattern.permute.xlu0 %v3799_v43  ;;  %v1772_v23 = vrot.slane %v1771_v22, 2  ;;  %v2058_v34 = vadd.f32 %v2057_v31, %v2056_v33 }
 0x68b   :  { %v1773_v9 = vmax.f32 %v1771_v22, %v1772_v23  ;;  %v3584_v23 = vmul.f32 0.0625, %v2058_v34 }
 0x68d   :  { %v1774_v2 = vrot.slane %v1773_v9, 1 }
 0x68f   :  { %v1775_v14 = vmax.f32 %v1773_v9, %v1774_v2 }
 0x691   :  { %v1776_v7 = vsub.f32 %v1759_v38, %v1775_v14  ;;  %v1777_v62 = vsub.f32 %v1760_v30, %v1775_v14  ;;  %v3568_v38 = vmul.f32 0.0625, %v1461_v8  ;;  %v3570_v30 = vmul.f32 0.0625, %v1468_v5  ;;  %v3801_v14 = vld [vmem:[#allocation14_spill] sm:$0xff] }
 0x693   :  { %v1778_v1 = vmul.f32 1.442695, %v1776_v7  ;;  %v1780_v19 = vmul.f32 1.442695, %v1777_v62  ;;  %v1488_v48 = vmax.f32 %v3568_v38, %v3570_v30  ;;  %v3803_v62 = vld [vmem:[#allocation12_spill] sm:$0xff] }
 0x695   :  { %2426 = vpow2.f32 %v1778_v1 }
 0x696   :  { %2428 = vpow2.f32 %v1780_v19 }
 0x6a2   :  { %v3572_v24 = vpop.eup %2426 }
 0x6a3   :  { %v3574_v57 = vpop.eup %2428  ;;  %v1796_v18 = vmul.f32 %v3572_v24, %v3517_v26  ;;  %v1795_v51 = vmul.f32 %v3572_v24, %v3514_v56 }
 0x6a4   :  { %v1798_v45 = vmul.f32 %v3574_v57, %v3525_v49  ;;  %v1797_v22 = vmul.f32 %v3574_v57, %v3522_v35  ;;  %v2077_v35 = vmax.f32 %v3582_v53, %v3584_v23  ;;  %v3800_v49 = vld [vmem:[#allocation11_spill] sm:$0xff] }
 0x6a6   :  { %1833 = vmatprep.subr.mxu0 %v1798_v45 }
 0x6a7   :  { %1834 = vmatpush1.msra.mxu0 %v1797_v22 }
 0x6a8   :  { %1489 = vmax.xlane.f32.xlu1 %v1488_v48  ;;  %1835 = vmatprep.subr.mxu0 %v1796_v18 }
 0x6a9   :  { %1836 = vmatpush1.msra.mxu0 %v1795_v51 }
 0x6aa   :  { %2261 = vmatmul.mubr.msk.f32.vlgmr.msra.gmra.mxu0 %vm188_vm0, %v3800_v49 }
 0x6ab   :  { %1940 = vmatprep.mubr.f32.mxu0 %v3784_v13 }
 0x6ac   :  { %2078 = vmax.xlane.f32.xlu1 %v2077_v35 }
 0x6f8   :  { %v1763_v9 = vpop.xlane.xlu0 %1762 }
 0x6f9   :  { %v1767_v60 = vmul.f32 0.00390625, %v1763_v9 }
 0x6fc   :  { %v1766_v61 = vpop.xlane.xlu1 %1765 }
 0x6fd   :  { %v1768_v26 = vmul.f32 0.00390625, %v1766_v61 }
 0x6ff   :  { %v1782_v2 = vmax.f32 %v1767_v60, %v1768_v26 }
 0x700   :  { %v3595_v29 = vpop.permute.xlu1 %1055  ;;  %v3597_v28 = vpop.permute.xlu0 %1050 }
 0x701   :  { %v1783_v56 = vrot.slane %v1782_v2, 4  ;;  %v3601_v40 = vadd.f32 %v3801_v14, %v3595_v29  ;;  %v3605_v7 = vadd.f32 %v3802_v4, %v3595_v29  ;;  %v3609_v12 = vadd.f32 %v3803_v62, %v3597_v28 }
 0x702   :  { %v3613_v1 = vadd.f32 %v3804_v39, %v3597_v28 }
 0x703   :  { %v1784_v19 = vmax.f32 %v1782_v2, %v1783_v56  ;;  %v1472_v15 = vadd.f32 %v3601_v40, %v3609_v12 }
 0x704   :  { %v1479_v52 = vadd.f32 %v3605_v7, %v3613_v1 }
 0x705   :  { %v1785_v20 = vrot.slane %v1784_v19, 2  ;;  %v1473_v17 = vrot.slane %v1472_v15, 4 }
 0x706   :  { %v1480_v0 = vrot.slane %v1479_v52, 4 }
 0x707   :  { %v1786_v10 = vmax.f32 %v1784_v19, %v1785_v20  ;;  %v1474_v16 = vadd.f32 %v1473_v17, %v1472_v15 }
 0x708   :  { %v1481_v33 = vadd.f32 %v1480_v0, %v1479_v52 }
 0x709   :  { %v1787_v8 = vrot.slane %v1786_v10, 1  ;;  %v1475_v5 = vrot.slane %v1474_v16, 2 }
 0x70a   :  { %v1482_v44 = vrot.slane %v1481_v33, 2 }
 0x70b   :  { %v1788_v31 = vmax.f32 %v1786_v10, %v1787_v8  ;;  %v1476_v46 = vadd.f32 %v1475_v5, %v1474_v16 }
 0x70c   :  { %v1483_v34 = vadd.f32 %v1482_v44, %v1481_v33 }
 0x70d   :  { %v1789_v45 = vsub.f32 %v1767_v60, %v1788_v31  ;;  %v1790_v22 = vsub.f32 %v1768_v26, %v1788_v31  ;;  %v1477_v48 = vrot.slane %v1476_v46, 1 }
 0x70e   :  { %v1484_v18 = vrot.slane %v1483_v34, 1 }
 0x70f   :  { %v1791_v51 = vmul.f32 1.442695, %v1789_v45  ;;  %v1793_v35 = vmul.f32 1.442695, %v1790_v22  ;;  %v1478_v9 = vadd.f32 %v1477_v48, %v1476_v46 }
 0x710   :  { %v1485_v61 = vadd.f32 %v1484_v18, %v1483_v34 }
 0x711   :  { %2430 = vpow2.f32 %v1791_v51  ;;  %v3619_v2 = vmul.f32 0.0625, %v1478_v9 }
 0x712   :  { %2432 = vpow2.f32 %v1793_v35  ;;  %v3621_v56 = vmul.f32 0.0625, %v1485_v61 }
 0x714   :  { %v1497_v14 = vmax.f32 %v3619_v2, %v3621_v56 }
 0x716   :  { %1498 = vmax.xlane.f32.xlu0 %v1497_v14 }
 0x71e   :  { %v2431_v4 = vpop.eup %2430 }
 0x71f   :  { %v2433_v62 = vpop.eup %2432  ;;  %v1800_v39 = vmul.f32 %v2431_v4, %v3487_v6  ;;  %v1799_v19 = vmul.f32 %v2431_v4, %v3484_v63  ;;  %v1803_v6 = vsel %vm1209_vm11, %v3572_v24, %v2431_v4 }
 0x720   :  { %v1802_v60 = vmul.f32 %v2433_v62, %v3497_v50  ;;  %v1801_v26 = vmul.f32 %v2433_v62, %v3494_v25  ;;  %v1804_v15 = vsel %vm1209_vm11, %v3574_v57, %v2433_v62 }
 0x722   :  { %1904 = vmatprep.subr.mxu0 %v1802_v60 }
 0x723   :  { %1905 = vmatpush1.msra.mxu0 %v1801_v26 }
 0x724   :  { %1906 = vmatprep.subr.mxu0 %v1800_v39 }
 0x725   :  { %1907 = vmatpush1.msra.mxu0 %v1799_v19 }
 0x726   :  { %2262 = vmatmul.mubr.msk.f32.vlgmr.msra.gmra.mxu0 %vm188_vm0, %v3800_v49  ;;  %2349 = vmatprep.subr.mxu0 %v3784_v13 }
 0x727   :  { %2350 = vmatpush3.msra.mxu0 %v1804_v15  ;;  %2353 = vmatprep.mubr.msk.f32.mxu0 %vm2510_vm10, %v3784_v13 }
 0x728   :  { %2351 = vmatprep.subr.mxu0 %v3784_v13 }
 0x729   :  { %2352 = vmatpush3.msra.mxu0 %v1803_v6 }
 0x72a   :  { %2354 = vmatmul.mubr.msk.f32.vlgmr.msra.gmra.mxu0 %vm188_vm0, %v3800_v49 }
 0x72b   :  { %2201 = vmatprep.mubr.f32.mxu0 %v3784_v13 }
 0x731   :  { %v1490_v63 = vpop.xlane.xlu1 %1489 }
 0x732   :  { %v1491_v14 = vsub.f32 %v3568_v38, %v1490_v63  ;;  %v1492_v4 = vsub.f32 %v3570_v30, %v1490_v63 }
 0x734   :  { %v1493_v26 = vmul.f32 1.442695, %v1491_v14  ;;  %v1495_v39 = vmul.f32 1.442695, %v1492_v4 }
 0x735   :  { %v2079_v25 = vpop.xlane.xlu1 %2078 }
 0x736   :  { %v2080_v50 = vsub.f32 %v3582_v53, %v2079_v25  ;;  %v2081_v57 = vsub.f32 %v3584_v23, %v2079_v25  ;;  %v1742_v23 = vpop.f32.mrf.mxu1 }
 0x737   :  { %v3657_v22 = vadd.f32 %v1742_v23, %v3597_v28 }
 0x738   :  { %v2082_v52 = vmul.f32 1.442695, %v2080_v50  ;;  %v2084_v20 = vmul.f32 1.442695, %v2081_v57  ;;  %v1744_v5 = vpop.f32.mrf.mxu1 }
 0x739   :  { %v3660_v48 = vadd.f32 %v1744_v5, %v3597_v28 }
 0x73a   :  { %2434 = vpow2.f32 %v2082_v52  ;;  %v1748_v44 = vpop.f32.mrf.mxu1 }
 0x73b   :  { %2436 = vpow2.f32 %v2084_v20  ;;  %v3651_v34 = vadd.f32 %v1748_v44, %v3595_v29 }
 0x73c   :  { %v1750_v46 = vpop.f32.mrf.mxu1 }
 0x73d   :  { %v3654_v45 = vadd.f32 %v1750_v46, %v3595_v29  ;;  %v2061_v18 = vadd.f32 %v3651_v34, %v3657_v22 }
 0x73f   :  { %v2068_v51 = vadd.f32 %v3654_v45, %v3660_v48  ;;  %v2062_v35 = vrot.slane %v2061_v18, 4 }
 0x741   :  { %v2069_v9 = vrot.slane %v2068_v51, 4  ;;  %v2063_v61 = vadd.f32 %v2062_v35, %v2061_v18 }
 0x743   :  { %v2070_v29 = vadd.f32 %v2069_v9, %v2068_v51  ;;  %v2064_v28 = vrot.slane %v2063_v61, 2 }
 0x745   :  { %v2071_v60 = vrot.slane %v2070_v29, 2  ;;  %v2065_v15 = vadd.f32 %v2064_v28, %v2063_v61 }
 0x747   :  { %v3644_v17 = vpop.eup %2434  ;;  %v2072_v6 = vadd.f32 %v2071_v60, %v2070_v29  ;;  %v2066_v57 = vrot.slane %v2065_v15, 1 }
 0x748   :  { %v3646_v0 = vpop.eup %2436 }
 0x749   :  { %v2095_v24 = vadd.f32 %v3646_v0, %v3644_v17  ;;  %v2073_v52 = vrot.slane %v2072_v6, 1  ;;  %v2067_v38 = vadd.f32 %v2066_v57, %v2065_v15 }
 0x74b   :  { %2096 = vadd.xlane.f32.xlu0 %v2095_v24  ;;  %v2074_v30 = vadd.f32 %v2073_v52, %v2072_v6  ;;  %v2075_v63 = vmul.f32 0.0625, %v2067_v38 }
 0x74d   :  { %v2076_v20 = vmul.f32 0.0625, %v2074_v30 }
 0x76a   :  { %v1871_v49 = vpop.f32.mrf.mxu0 }
 0x76c   :  { %v1873_v10 = vpop.f32.mrf.mxu0 }
 0x79f   :  { %v1499_v62 = vpop.xlane.xlu0 %1498 }
 0x7a0   :  { %v1501_v19 = vsub.f32 %v3621_v56, %v1499_v62 }
 0x7a2   :  { %v1504_v50 = vmul.f32 1.442695, %v1501_v19 }
 0x7e6   :  { %v1942_v16 = vpop.f32.mrf.mxu0 }
 0x7e8   :  { %v1944_v33 = vpop.f32.mrf.mxu0 }
 0x7ea   :  { %v2013_v8 = vpop.f32.mrf.mxu0 }
 0x7eb   :  { %2438 = vrcp.f32 %v2013_v8  ;;  %v2086_v8 = vmax.f32 %v2075_v63, %v2076_v20 }
 0x7ec   :  { %v2355_v53 = vpop.f32.mrf.mxu0  ;;  %2440 = vpow2.f32 %v1493_v26 }
 0x7ed   :  { %2442 = vpow2.f32 %v1495_v39 }
 0x7f8   :  { %v2439_v31 = vpop.eup %2438 }
 0x7f9   :  { %2020 = vperm.xlu1 %2375, %v2439_v31   ;;  %v2441_v24 = vpop.eup %2440 }
 0x7fd   :  { %2378 = vset.pattern.permute.xlu1 %v3799_v43  ;;  %v1500_v43 = vsub.f32 %v3619_v2, %v1499_v62  ;;  %v2443_v2 = vpop.eup %2442 }
 0x7fe   :  { %2026 = vperm.xlu1 %2378, %v2439_v31   ;;  %v1506_v56 = vadd.f32 %v2443_v2, %v2441_v24 }
 0x7ff   :  { %v1502_v25 = vmul.f32 1.442695, %v1500_v43 }
 0x801   :  { %2444 = vpow2.f32 %v1502_v25 }
 0x802   :  { %2446 = vpow2.f32 %v1504_v50 }
 0x80e   :  { %v2445_v53 = vpop.eup %2444 }
 0x80f   :  { %v2447_v23 = vpop.eup %2446 }
 0x810   :  { %v1512_v5 = vadd.f32 %v2447_v23, %v2445_v53 }
 0x822   :  { %2087 = vmax.xlane.f32.xlu1 %v2086_v8 }
 0x826   :  { %1507 = vadd.xlane.f32.xlu1 %v1506_v56 }
 0x82a   :  { %1513 = vadd.xlane.f32.xlu1 %v1512_v5 }
 0x874   :  { %v2021_v44 = vpop.permute.xlu1 %2020 }
 0x875   :  { %v2023_v46 = vmul.f32 %v2021_v44, %v1871_v49  ;;  %v2024_v18 = vmul.f32 %v2021_v44, %v1873_v10 }
 0x879   :  { %v2027_v31 = vpop.permute.xlu1 %2026 }
 0x87a   :  { %v2029_v51 = vmul.f32 %v2027_v31, %v1942_v16  ;;  %v2030_v35 = vmul.f32 %v2027_v31, %v1944_v33 }
 0x87c   :  { %v2031_v9 = vadd.f32 %v2029_v51, %v2023_v46  ;;  %v2032_v61 = vadd.f32 %v2030_v35, %v2024_v18 }
 0x87e   :  { %v2264_v29 = vmul.f32 -1.442695, %v2031_v9  ;;  %v2265_v14 = vmul.f32 -1.442695, %v2032_v61 }
 0x880   :  { %2448 = vpow2.f32 %v2264_v29 }
 0x881   :  { %2450 = vpow2.f32 %v2265_v14 }
 0x88d   :  { %v2449_v4 = vpop.eup %2448 }
 0x88e   :  { %v2451_v62 = vpop.eup %2450  ;;  %v2039_v28 = vadd.f32 1.0, %v2449_v4 }
 0x88f   :  { %v2040_v60 = vadd.f32 1.0, %v2451_v62 }
 0x890   :  { %2452 = vrcp.f32 %v2039_v28 }
 0x891   :  { %2454 = vrcp.f32 %v2040_v60 }
 0x89d   :  { %v2453_v26 = vpop.eup %2452 }
 0x89e   :  { %v2455_v43 = vpop.eup %2454 }
 0x89f   :  { %2167 = vmatprep.subr.mxu0 %v2455_v43 }
 0x8a0   :  { %2168 = vmatpush1.msra.mxu0 %v2453_v26 }
 0x8a1   :  { %2268 = vmatmul.mubr.msk.f32.vlgmr.msra.gmra.mxu0 %vm1548_vm12, %v3347_v3 }
 0x8a2   :  { %2207 = vmatprep.mubr.f32.mxu0 %v3784_v13 }
 0x8a5   :  { %2269 = vmatmul.mubr.msk.f32.gmra.mxu0 %vm1548_vm12, %v3369_v21 }
 0x8ab   :  { %v2088_v49 = vpop.xlane.xlu1 %2087 }
 0x8ac   :  { %v2089_v10 = vsub.f32 %v2075_v63, %v2088_v49  ;;  %v2090_v16 = vsub.f32 %v2076_v20, %v2088_v49 }
 0x8ae   :  { %v2091_v33 = vmul.f32 1.442695, %v2089_v10  ;;  %v2093_v39 = vmul.f32 1.442695, %v2090_v16 }
 0x8af   :  { %v1508_v19 = vpop.xlane.xlu1 %1507 }
 0x8b0   :  { %2456 = vpow2.f32 %v2091_v33 }
 0x8b1   :  { %2458 = vpow2.f32 %v2093_v39 }
 0x8b2   :  { %2460 = vrcp.f32 %v1508_v19 }
 0x8b3   :  { %v1514_v15 = vpop.xlane.xlu1 %1513 }
 0x8b4   :  { %2462 = vrcp.f32 %v1514_v15  ;;  %v2489_v15 = vld [vmem:[%s3747_s0 + $0x10] sm:$0xff] }
 0x8bd   :  { %v2457_v6 = vpop.eup %2456 }
 0x8be   :  { %v2459_v25 = vpop.eup %2458 }
 0x8bf   :  { %v2461_v50 = vpop.eup %2460  ;;  %v2101_v3 = vadd.f32 %v2459_v25, %v2457_v6 }
 0x8c0   :  { %v1510_v57 = vmul.f32 %v2461_v50, %v2441_v24  ;;  %v1511_v13 = vmul.f32 %v2461_v50, %v2443_v2 }
 0x8c1   :  { %v2463_v52 = vpop.eup %2462  ;;  %2102 = vadd.xlane.f32.xlu1 %v2101_v3 }
 0x8c2   :  { %v1516_v21 = vmul.f32 %v2463_v52, %v2445_v53  ;;  %v1517_v38 = vmul.f32 %v2463_v52, %v2447_v23  ;;  %v1520_v30 = vmul.f32 %v1510_v57, %v3601_v40  ;;  %v1521_v63 = vmul.f32 %v1511_v13, %v3605_v7  ;;  %v2097_v7 = vpop.xlane.xlu0 %2096 }
 0x8c3   :  { %v1518_v20 = vmul.f32 %v1510_v57, %v3609_v12  ;;  %v1519_v8 = vmul.f32 %v1511_v13, %v3613_v1  ;;  %2464 = vrcp.f32 %v2097_v7  ;;  %v2494_v7 = vld [vmem:[%s3747_s0 + $0x38] sm:$0xff] }
 0x8c4   :  { %v1524_v56 = vmul.f32 %v1516_v21, %v3539_v32  ;;  %v1525_v5 = vmul.f32 %v1517_v38, %v3541_v59  ;;  %v1522_v44 = vmul.f32 %v1516_v21, %v3545_v36  ;;  %v1523_v24 = vmul.f32 %v1517_v38, %v3547_v58 }
 0x8c6   :  { %v1528_v2 = vadd.f32 %v1524_v56, %v1520_v30  ;;  %v1529_v31 = vadd.f32 %v1525_v5, %v1521_v63  ;;  %v1526_v53 = vadd.f32 %v1522_v44, %v1518_v20  ;;  %v1527_v23 = vadd.f32 %v1523_v24, %v1519_v8 }
 0x8c8   :  { %v1533_v46 = vadd.f32 %v1529_v31, %v1528_v2  ;;  %v1530_v40 = vadd.f32 %v1527_v23, %v1526_v53 }
 0x8ca   :  { %1534 = vadd.xlane.f32.xlu1 %v1533_v46  ;;  %1531 = vadd.xlane.f32.xlu0 %v1530_v40  ;;  %v2493_v46 = vld [vmem:[%s3747_s0 + $0x30] sm:$0xff] }
 0x8d0   :  { %v2465_v1 = vpop.eup %2464 }
 0x8d1   :  { %v2099_v36 = vmul.f32 %v2465_v1, %v3644_v17  ;;  %v2100_v58 = vmul.f32 %v2465_v1, %v3646_v0  ;;  %v2495_v1 = vld [vmem:[%s3747_s0 + $0x20] sm:$0xff] }
 0x8d3   :  { %v2109_v29 = vmul.f32 %v2099_v36, %v3651_v34  ;;  %v2110_v14 = vmul.f32 %v2100_v58, %v3654_v45  ;;  %v2107_v4 = vmul.f32 %v2099_v36, %v3657_v22  ;;  %v2108_v62 = vmul.f32 %v2100_v58, %v3660_v48 }
 0x94a   :  { %v2103_v12 = vpop.xlane.xlu1 %2102 }
 0x94b   :  { %2466 = vrcp.f32 %v2103_v12 }
 0x953   :  { %v1535_v32 = vpop.xlane.xlu1 %1534  ;;  %v1532_v18 = vpop.xlane.xlu0 %1531 }
 0x954   :  { %v2254_v59 = vmul.f32 -1.442695, %v1535_v32  ;;  %v2253_v51 = vmul.f32 -1.442695, %v1532_v18  ;;  %v2496_v18 = vld [vmem:[%s3747_s0 + $0x28] sm:$0xff] }
 0x956   :  { %2468 = vpow2.f32 %v2254_v59 }
 0x957   :  { %2470 = vpow2.f32 %v2253_v51 }
 0x958   :  { %v2467_v35 = vpop.eup %2466 }
 0x959   :  { %v2105_v9 = vmul.f32 %v2467_v35, %v2457_v6  ;;  %v2106_v61 = vmul.f32 %v2467_v35, %v2459_v25  ;;  %v2490_v25 = vld [vmem:[%s3747_s0 + $0x18] sm:$0xff] }
 0x95b   :  { %v2113_v28 = vmul.f32 %v2105_v9, %v3551_v47  ;;  %v2114_v60 = vmul.f32 %v2106_v61, %v3553_v54  ;;  %v2111_v17 = vmul.f32 %v2105_v9, %v3559_v27  ;;  %v2112_v0 = vmul.f32 %v2106_v61, %v3561_v42 }
 0x95d   :  { %v2117_v26 = vadd.f32 %v2113_v28, %v2109_v29  ;;  %v2118_v43 = vadd.f32 %v2114_v60, %v2110_v14  ;;  %v2115_v49 = vadd.f32 %v2111_v17, %v2107_v4  ;;  %v2116_v10 = vadd.f32 %v2112_v0, %v2108_v62 }
 0x95f   :  { %v2122_v16 = vadd.f32 %v2118_v43, %v2117_v26  ;;  %v2119_v34 = vadd.f32 %v2116_v10, %v2115_v49 }
 0x961   :  { %2123 = vadd.xlane.f32.xlu1 %v2122_v16  ;;  %2120 = vadd.xlane.f32.xlu0 %v2119_v34  ;;  %v2203_v20 = vpop.f32.mrf.mxu0 }
 0x963   :  { %v2469_v45 = vpop.eup %2468  ;;  %v2205_v8 = vpop.f32.mrf.mxu0 }
 0x964   :  { %v2471_v22 = vpop.eup %2470  ;;  %v1543_v33 = vadd.f32 1.0, %v2469_v45 }
 0x965   :  { %v1542_v48 = vadd.f32 1.0, %v2471_v22  ;;  %v2209_v56 = vpop.f32.mrf.mxu0 }
 0x966   :  { %2472 = vrcp.f32 %v1543_v33 }
 0x967   :  { %2474 = vrcp.f32 %v1542_v48  ;;  %v2211_v44 = vpop.f32.mrf.mxu0 }
 0x973   :  { %v2473_v47 = vpop.eup %2472 }
 0x974   :  { %v2475_v54 = vpop.eup %2474  ;;  %v1628_v27 = vadd.f32 %v2473_v47, %v3509_v55  ;;  %v1630_v42 = vadd.f32 %v2473_v47, %v3511_v11  ;;  %v2491_v55 = vld [vmem:[%s3747_s0] sm:$0xff] }
 0x975   :  { %v1622_v39 = vadd.f32 %v2475_v54, %v3503_v37  ;;  %v1624_v19 = vadd.f32 %v2475_v54, %v3506_v41  ;;  %v2492_v37 = vld [vmem:[%s3747_s0 + $0x8] sm:$0xff] }
 0x976   :  { %v1634_v6 = vmul.f32 %v2489_v15, %v1628_v27  ;;  %v1635_v50 = vmul.f32 %v2490_v25, %v1630_v42 }
 0x977   :  { %v1632_v3 = vmul.f32 %v2491_v55, %v1622_v39  ;;  %v1633_v41 = vmul.f32 %v2492_v37, %v1624_v19 }
 0x978   :  { %1638 = vst [vmem:[%s3755_s9 + $0x10] sm:$0xff] %v1634_v6  ;;  %1639 = vst [vmem:[%s3755_s9 + $0x18] sm:$0xff] %v1635_v50 }
 0x979   :  { %1636 = vst [vmem:[%s3755_s9] sm:$0xff] %v1632_v3  ;;  %1637 = vst [vmem:[%s3755_s9 + $0x8] sm:$0xff] %v1633_v41 }
 0x9ea   :  { %v2124_v11 = vpop.xlane.xlu1 %2123  ;;  %v2121_v57 = vpop.xlane.xlu0 %2120 }
 0x9eb   :  { %v2267_v13 = vmul.f32 -1.442695, %v2124_v11  ;;  %v2266_v52 = vmul.f32 -1.442695, %v2121_v57 }
 0x9ed   :  { %2476 = vpow2.f32 %v2267_v13 }
 0x9ee   :  { %2478 = vpow2.f32 %v2266_v52 }
 0x9fa   :  { %v2477_v21 = vpop.eup %2476 }
 0x9fb   :  { %v2479_v38 = vpop.eup %2478  ;;  %v2132_v30 = vadd.f32 1.0, %v2477_v21 }
 0x9fc   :  { %v2131_v63 = vadd.f32 1.0, %v2479_v38 }
 0x9fd   :  { %2480 = vrcp.f32 %v2132_v30 }
 0x9fe   :  { %2482 = vrcp.f32 %v2131_v63 }
 0xa0a   :  { %v2481_v5 = vpop.eup %2480 }
 0xa0b   :  { %v2483_v24 = vpop.eup %2482  ;;  %v2210_v2 = vadd.f32 %v2481_v5, %v2209_v56  ;;  %v2212_v31 = vadd.f32 %v2481_v5, %v2211_v44 }
 0xa0c   :  { %v2204_v53 = vadd.f32 %v2483_v24, %v2203_v20  ;;  %v2206_v23 = vadd.f32 %v2483_v24, %v2205_v8 }
 0xa0d   :  { %v2216_v40 = vmul.f32 %v2493_v46, %v2210_v2  ;;  %v2217_v12 = vmul.f32 %v2494_v7, %v2212_v31 }
 0xa0e   :  { %v2214_v32 = vmul.f32 %v2495_v1, %v2204_v53  ;;  %v2215_v59 = vmul.f32 %v2496_v18, %v2206_v23 }
 0xa0f   :  { %2220 = vst [vmem:[%s3755_s9 + $0x30] sm:$0xff] %v2216_v40  ;;  %2221 = vst [vmem:[%s3755_s9 + $0x38] sm:$0xff] %v2217_v12 }
 0xa10   :  { %2218 = vst [vmem:[%s3755_s9 + $0x20] sm:$0xff] %v2214_v32  ;;  %2219 = vst [vmem:[%s3755_s9 + $0x28] sm:$0xff] %v2215_v59 }

</bundles_post_ra>
